<compile_context>
chip_gen: v7x
topology: tpu7x:2x2x1
jax: 0.10.0
libtpu: 0.0.40
codegen_flags: <defaults>
</compile_context>

<pallas_src>
import jax
import jax.numpy as jnp
import numpy as np
from jax import lax
from jax.experimental import pallas as pl
from jax.experimental.pallas import tpu as pltpu

EPS = 1e-5
MM_DTYPE = jnp.bfloat16      # MXU operand dtype (accumulation is always f32)
ACT_DTYPE = jnp.bfloat16     # storage dtype of the conv1 output h1


def _vmem_limit_bytes():
    """~3/4 of physical VMEM (112 MiB on v5e/v6e, 48 MiB on v7x)."""
    cap = 64 * 1024 * 1024
    try:
        cap = int(pltpu.get_tpu_info().vmem_capacity_bytes)
    except Exception:
        pass
    lim = max((cap * 3) // 4, cap - 16 * 1024 * 1024)
    return max(lim, 32 * 1024 * 1024)


def _divisors_desc(n):
    return [d for d in range(n, 0, -1) if n % d == 0]


def _pick_rows(total_rows, bytes_per_row, budget):
    """Largest divisor of total_rows fitting the VMEM budget, preferring >= 2 steps."""
    fitting = [d for d in _divisors_desc(total_rows) if d * bytes_per_row <= budget]
    for d in fitting:
        if total_rows // d >= 2:
            return d
    return fitting[0] if fitting else 1


def _pick_conv_rows(Ho, Wo, bytes_per_row, budget, lane_dense_out):
    """Row tile for the 3x3-conv stages.  With lane_dense_out the flattened NCHW
    output block's last dim (TRH*Wo) must be a multiple of 128 (or the whole
    image) to satisfy the lane-tiling rule."""
    def ok(d):
        if d * bytes_per_row > budget:
            return False
        if lane_dense_out and d != Ho and (d * Wo) % 128 != 0:
            return False
        return True

    cands = [d for d in _divisors_desc(Ho) if ok(d)]
    for d in cands:
        if Ho // d >= 2:
            return d
    return cands[0] if cands else Ho


# --------------------------------------------------------------------------- #
# Stage 1: 2x2 / stride-2 conv as one matmul over space-to-depth rows,
#          plus per-tile partial sums for BN1 statistics.
# --------------------------------------------------------------------------- #
def _downsample_stats_kernel(x_ref, w_ref, b_ref, y_ref, st_ref):
    # x_ref : (TR, Wo, 4*Cin) bf16   space-to-depth rows (tap order ky, kx, ci)
    # w_ref : (4*Cin, C)      bf16   downsampling conv weight
    # b_ref : (1, C)          f32    downsampling conv bias
    # y_ref : (TR, Wo, C)     f32    y0 tile
    # st_ref: (1, 1, 2*C)     f32    per-tile [sum | sum_sq] over pixels
    TR, Wo, K = x_ref.shape
    C = w_ref.shape[1]
    x = x_ref[...].reshape(TR * Wo, K)
    y = jnp.dot(x, w_ref[...], preferred_element_type=jnp.float32) + b_ref[...]
    y_ref[...] = y.reshape(TR, Wo, C)
    st_ref[...] = jnp.concatenate(
        [jnp.sum(y, axis=0, keepdims=True),
         jnp.sum(y * y, axis=0, keepdims=True)], axis=-1).reshape(1, 1, 2 * C)


# --------------------------------------------------------------------------- #
# Stages 2/3: fused (BN + ReLU) -> 3x3 conv (pad=1, no bias) as 9 accumulating
#             K=C MXU matmuls; optionally + residual shortcut / BN partial stats.
#             Row-tiled: the 1-row halo arrives as two extra 1-row refs.
# --------------------------------------------------------------------------- #
def _make_bn_conv3x3_kernel(TRH, Wo, C, *, add_shortcut, emit_stats, out_nchw):
    f32 = jnp.float32

    def kernel(*refs):
        it = iter(refs)
        xc_ref = next(it)                              # (1, TRH, Wo, C) center rows (pre-BN)
        xt_ref = next(it)                              # (1, 1, Wo, C)   row above (clamped)
        xb_ref = next(it)                              # (1, 1, Wo, C)   row below (clamped)
        a_ref = next(it)                               # (1, C) folded BN scale
        b_ref = next(it)                               # (1, C) folded BN shift
        w_ref = next(it)                               # (9, C, C) bf16 taps [ci, co]
        sc_ref = next(it) if add_shortcut else None    # (1, TRH, Wo, C) f32 shortcut
        out_ref = next(it)
        st_ref = next(it) if emit_stats else None      # (1, 1, 2*C)

        i = pl.program_id(1)
        n_rt = pl.num_programs(1)
        a = a_ref[...].reshape(1, 1, C)
        b = b_ref[...].reshape(1, 1, C)

        def bn_relu(v):
            return jnp.maximum(v.astype(f32) * a + b, 0.0)

        center = bn_relu(xc_ref[...].reshape(TRH, Wo, C))
        top = bn_relu(xt_ref[...].reshape(1, Wo, C))
        bot = bn_relu(xb_ref[...].reshape(1, Wo, C))
        # zero the halo rows at the image boundary (conv zero padding)
        top = jnp.where(i > 0, top, jnp.zeros_like(top))
        bot = jnp.where(i < n_rt - 1, bot, jnp.zeros_like(bot))

        rows = jnp.concatenate([top, center, bot], axis=0)        # (TRH+2, Wo, C)
        zcol = jnp.zeros((TRH + 2, 1, C), f32)
        padded = jnp.concatenate([zcol, rows, zcol], axis=1)      # (TRH+2, Wo+2, C)

        # 3x3 conv = 9 accumulating K=C matmuls (no 9C-wide im2col concat).
        acc = jnp.zeros((TRH * Wo, C), f32)
        for t in range(9):
            dy, dx = divmod(t, 3)
            lhs = (padded[dy:dy + TRH, dx:dx + Wo, :]
                   .reshape(TRH * Wo, C).astype(MM_DTYPE))
            acc = acc + jnp.dot(lhs, w_ref[t], preferred_element_type=f32)

        if emit_stats:
            st_ref[...] = jnp.concatenate(
                [jnp.sum(acc, axis=0, keepdims=True),
                 jnp.sum(acc * acc, axis=0, keepdims=True)],
                axis=-1).reshape(1, 1, 2 * C)

        out = acc
        if add_shortcut:
            out = out + sc_ref[...].reshape(TRH * Wo, C)

        if out_nchw:
            # emit (C, rows*Wo): lane-dense last dim, no wrapper output transpose
            out_ref[...] = (jnp.transpose(out, (1, 0))
                            .reshape(1, C, TRH * Wo).astype(out_ref.dtype))
        else:
            out_ref[...] = out.reshape(1, TRH, Wo, C).astype(out_ref.dtype)

    return kernel


# --------------------------------------------------------------------------- #
# Wrapper
# --------------------------------------------------------------------------- #
def encoder_block_pallas(x_nchw, w_ds, b_ds, g1, beta1, w1, g2, beta2, w2):
    """EncoderBlock forward. x_nchw: (B, Cin, H, W) f32 -> (B, Cout, H//2, W//2) f32."""
    B, Cin, H, W = x_nchw.shape
    Cout = w_ds.shape[0]
    assert H % 2 == 0 and W % 2 == 0
    Ho, Wo, C = H // 2, W // 2, Cout
    R = B * Ho
    n_pix = B * Ho * Wo
    f32 = jnp.float32

    vmem_limit = _vmem_limit_bytes()
    budget = vmem_limit // 2                 # headroom for weights / compiler scratch
    cp1 = pltpu.CompilerParams(dimension_semantics=("parallel",),
                               vmem_limit_bytes=vmem_limit)
    cp2 = pltpu.CompilerParams(dimension_semantics=("parallel", "parallel"),
                               vmem_limit_bytes=vmem_limit)

    # ---- layout glue: ONE fused reshape+transpose+cast pass for the input ----
    x_s2d = (x_nchw.reshape(B, Cin, Ho, 2, Wo, 2)
             .transpose(0, 2, 4, 3, 5, 1)            # (B, Ho, Wo, ky, kx, ci)
             .reshape(R, Wo, 4 * Cin)
             .astype(MM_DTYPE))
    w_ds_f = jnp.transpose(w_ds, (2, 3, 1, 0)).reshape(4 * Cin, C).astype(MM_DTYPE)
    b_ds_f = b_ds.reshape(1, C).astype(f32)
    # 3x3 conv weights -> (tap, ci, co), tap = 3*ky + kx
    w1_f = jnp.transpose(w1, (2, 3, 1, 0)).reshape(9, C, C).astype(MM_DTYPE)
    w2_f = jnp.transpose(w2, (2, 3, 1, 0)).reshape(9, C, C).astype(MM_DTYPE)

    # ---- stage 1: downsampling conv + BN1 partial stats (tiled over rows) ----
    bpr1 = Wo * (4 * Cin * 2 + C * 4) * 3
    TR1 = _pick_rows(R, bpr1, budget)
    nt1 = R // TR1
    y0_rows, st1 = pl.pallas_call(
        _downsample_stats_kernel,
        out_shape=(jax.ShapeDtypeStruct((R, Wo, C), f32),
                   jax.ShapeDtypeStruct((nt1, 1, 2 * C), f32)),
        grid=(nt1,),
        in_specs=[pl.BlockSpec((TR1, Wo, 4 * Cin), lambda i: (i, 0, 0)),
                  pl.BlockSpec((4 * Cin, C), lambda i: (0, 0)),
                  pl.BlockSpec((1, C), lambda i: (0, 0))],
        out_specs=(pl.BlockSpec((TR1, Wo, C), lambda i: (i, 0, 0)),
                   pl.BlockSpec((1, 1, 2 * C), lambda i: (i, 0, 0))),
        compiler_params=cp1,
    )(x_s2d, w_ds_f, b_ds_f)
    y0 = y0_rows.reshape(B, Ho, Wo, C)               # free: same memory layout

    def fold_bn(st, gamma, beta):
        # training-mode BatchNorm: biased batch stats folded into scale/shift
        s = jnp.sum(st.reshape(-1, 2 * C), axis=0)
        mean = s[:C] / n_pix
        var = jnp.maximum(s[C:] / n_pix - mean * mean, 0.0)
        a = gamma.astype(f32) * lax.rsqrt(var + EPS)
        b = beta.astype(f32) - mean * a
        return a.reshape(1, C), b.reshape(1, C)

    a1, sh1 = fold_bn(st1, g1, beta1)

    bpr_conv = Wo * C * 48
    # ---- stage 2: BN1+ReLU -> conv1 -> h1 (bf16) + BN2 partial stats ----
    TRH2 = _pick_conv_rows(Ho, Wo, bpr_conv, budget, lane_dense_out=False)
    NRT2 = Ho // TRH2
    h1, st2 = pl.pallas_call(
        _make_bn_conv3x3_kernel(TRH2, Wo, C, add_shortcut=False,
                                emit_stats=True, out_nchw=False),
        out_shape=(jax.ShapeDtypeStruct((B, Ho, Wo, C), ACT_DTYPE),
                   jax.ShapeDtypeStruct((B * NRT2, 1, 2 * C), f32)),
        grid=(B, NRT2),
        in_specs=[
            pl.BlockSpec((1, TRH2, Wo, C), lambda b, i: (b, i, 0, 0)),
            pl.BlockSpec((1, 1, Wo, C),
                         lambda b, i: (b, jnp.maximum(i * TRH2 - 1, 0), 0, 0)),
            pl.BlockSpec((1, 1, Wo, C),
                         lambda b, i: (b, jnp.minimum((i + 1) * TRH2, Ho - 1), 0, 0)),
            pl.BlockSpec((1, C), lambda b, i: (0, 0)),
            pl.BlockSpec((1, C), lambda b, i: (0, 0)),
            pl.BlockSpec((9, C, C), lambda b, i: (0, 0, 0)),
        ],
        out_specs=(pl.BlockSpec((1, TRH2, Wo, C), lambda b, i: (b, i, 0, 0)),
                   pl.BlockSpec((1, 1, 2 * C), lambda b, i: (b * NRT2 + i, 0, 0))),
        compiler_params=cp2,
    )(y0, y0, y0, a1, sh1, w1_f)

    a2, sh2 = fold_bn(st2, g2, beta2)

    # ---- stage 3: BN2+ReLU -> conv2 + residual shortcut, emitted NCHW-flat ----
    TRH3 = _pick_conv_rows(Ho, Wo, bpr_conv, budget, lane_dense_out=True)
    NRT3 = Ho // TRH3
    out_flat = pl.pallas_call(
        _make_bn_conv3x3_kernel(TRH3, Wo, C, add_shortcut=True,
                                emit_stats=False, out_nchw=True),
        out_shape=jax.ShapeDtypeStruct((B, C, Ho * Wo), f32),
        grid=(B, NRT3),
        in_specs=[
            pl.BlockSpec((1, TRH3, Wo, C), lambda b, i: (b, i, 0, 0)),
            pl.BlockSpec((1, 1, Wo, C),
                         lambda b, i: (b, jnp.maximum(i * TRH3 - 1, 0), 0, 0)),
            pl.BlockSpec((1, 1, Wo, C),
                         lambda b, i: (b, jnp.minimum((i + 1) * TRH3, Ho - 1), 0, 0)),
            pl.BlockSpec((1, C), lambda b, i: (0, 0)),
            pl.BlockSpec((1, C), lambda b, i: (0, 0)),
            pl.BlockSpec((9, C, C), lambda b, i: (0, 0, 0)),
            pl.BlockSpec((1, TRH3, Wo, C), lambda b, i: (b, i, 0, 0)),   # shortcut y0
        ],
        out_specs=pl.BlockSpec((1, C, TRH3 * Wo), lambda b, i: (b, 0, i)),
        compiler_params=cp2,
    )(h1, h1, h1, a2, sh2, w2_f, y0)

    return out_flat.reshape(B, C, Ho, Wo)            # free: same memory layout


# ---------------- pure-JAX reference (NCHW, mirrors PyTorch exactly) ---------------- #
def encoder_block_ref(x, w_ds, b_ds, g1, b1, w1, g2, b2, w2):
    dn = ('NCHW', 'OIHW', 'NCHW')

    def bn_relu(h, g, b):
        mu = h.mean(axis=(0, 2, 3), keepdims=True)
        var = ((h - mu) ** 2).mean(axis=(0, 2, 3), keepdims=True)
        hn = (h - mu) * lax.rsqrt(var + EPS) * g.reshape(1, -1, 1, 1) + b.reshape(1, -1, 1, 1)
        return jnp.maximum(hn, 0.0)

    y0 = lax.conv_general_dilated(x, w_ds, (2, 2), 'VALID', dimension_numbers=dn)
    y0 = y0 + b_ds.reshape(1, -1, 1, 1)
    s = y0
    h = bn_relu(y0, g1, b1)
    h = lax.conv_general_dilated(h, w1, (1, 1), ((1, 1), (1, 1)), dimension_numbers=dn)
    h = bn_relu(h, g2, b2)
    h = lax.conv_general_dilated(h, w2, (1, 1), ((1, 1), (1, 1)), dimension_numbers=dn)
    return h + s


if __name__ == "__main__":
    B, Cin, Cout, H, W = 2, 4, 8, 16, 16

    keys = jax.random.split(jax.random.PRNGKey(0), 9)
    w_ds = jax.random.normal(keys[0], (Cout, Cin, 2, 2), jnp.float32) * 0.1
    b_ds = jax.random.normal(keys[1], (Cout,), jnp.float32) * 0.1
    g1 = 1.0 + 0.1 * jax.random.normal(keys[2], (Cout,), jnp.float32)
    beta1 = 0.1 * jax.random.normal(keys[3], (Cout,), jnp.float32)
    w1 = jax.random.normal(keys[4], (Cout, Cout, 3, 3), jnp.float32) * 0.1
    g2 = 1.0 + 0.1 * jax.random.normal(keys[5], (Cout,), jnp.float32)
    beta2 = 0.1 * jax.random.normal(keys[6], (Cout,), jnp.float32)
    w2 = jax.random.normal(keys[7], (Cout, Cout, 3, 3), jnp.float32) * 0.1
    x = jax.random.normal(keys[8], (B, Cin, H, W), jnp.float32)

    fwd = jax.jit(encoder_block_pallas)
    out = fwd(x, w_ds, b_ds, g1, beta1, w1, g2, beta2, w2)
    out = jax.block_until_ready(out)

    ref = encoder_block_ref(x, w_ds, b_ds, g1, beta1, w1, g2, beta2, w2)
    ref = jax.block_until_ready(ref)

    # bf16 MXU operands (downsample + both 3x3 convs) and bf16 h1 storage vs the
    # f32 PyTorch reference => explicitly accepted 2e-2 tolerance.
    np.testing.assert_allclose(np.asarray(out), np.asarray(ref), rtol=2e-2, atol=2e-2)
    print("KERNEL_OK")
</pallas_src>

<mosaic_0001>
module attributes {stable_mosaic.version = 11 : i64} {
  func.func @_downsample_stats_kernel(%arg0: i32, %arg1: memref<8x8x16xbf16, #tpu.memory_space<vmem>>, %arg2: memref<16x8xbf16, #tpu.memory_space<vmem>>, %arg3: memref<1x8xf32, #tpu.memory_space<vmem>>, %arg4: memref<8x8x8xf32, #tpu.memory_space<vmem>>, %arg5: memref<1x1x16xf32, #tpu.memory_space<vmem>>) attributes {dimension_semantics = [#tpu.dimension_semantics<parallel>], iteration_bounds = array<i64: 2>, scalar_prefetch = 0 : i64, scratch_operands = 0 : i64, tpu.core_type = #tpu.core_type<tc>, window_params = [{transform_indices = @transform_0, window_bounds = array<i64: 8, 8, 16>}, {pipeline_mode = #tpu.pipeline_mode<synchronous>, transform_indices = @transform_1, window_bounds = array<i64: 16, 8>}, {pipeline_mode = #tpu.pipeline_mode<synchronous>, transform_indices = @transform_2, window_bounds = array<i64: 1, 8>}, {transform_indices = @transform_3, window_bounds = array<i64: 8, 8, 8>}, {transform_indices = @transform_4, window_bounds = array<i64: 1, 1, 16>}]} {
    %c0 = arith.constant 0 : index
    %c0_0 = arith.constant 0 : index
    %c0_1 = arith.constant 0 : index
    %0 = vector.load %arg1[%c0, %c0_0, %c0_1] : memref<8x8x16xbf16, #tpu.memory_space<vmem>>, vector<8x8x16xbf16>
    %1 = vector.shape_cast %0 : vector<8x8x16xbf16> to vector<64x16xbf16>
    %c0_2 = arith.constant 0 : index
    %c0_3 = arith.constant 0 : index
    %2 = vector.load %arg2[%c0_2, %c0_3] : memref<16x8xbf16, #tpu.memory_space<vmem>>, vector<16x8xbf16>
    %cst = arith.constant dense<0.000000e+00> : vector<64x8xf32>
    %3 = tpu.matmul %1, %2, %cst {dimension_numbers = #tpu.dot_dimension_numbers<[1], [0], [0], [1], [0, 0, 1, 1], [], []>} : vector<64x16xbf16>, vector<16x8xbf16>, vector<64x8xf32> -> vector<64x8xf32>
    %c0_4 = arith.constant 0 : index
    %c0_5 = arith.constant 0 : index
    %4 = vector.load %arg3[%c0_4, %c0_5] : memref<1x8xf32, #tpu.memory_space<vmem>>, vector<1x8xf32>
    %5 = vector.broadcast %4 : vector<1x8xf32> to vector<64x8xf32>
    %6 = arith.addf %3, %5 : vector<64x8xf32>
    %7 = vector.shape_cast %6 : vector<64x8xf32> to vector<8x8x8xf32>
    %c0_6 = arith.constant 0 : index
    %c0_7 = arith.constant 0 : index
    %c0_8 = arith.constant 0 : index
    %8 = vector.load %arg4[%c0_6, %c0_7, %c0_8] : memref<8x8x8xf32, #tpu.memory_space<vmem>>, vector<8x8x8xf32>
    tpu.vector_store %arg4[%c0_6, %c0_7, %c0_8], %7 {strides = array<i32>} : memref<8x8x8xf32, #tpu.memory_space<vmem>>, vector<8x8x8xf32>,
    %cst_9 = arith.constant dense<0.000000e+00> : vector<8xf32>
    %9 = vector.multi_reduction <add>, %6, %cst_9 [0] : vector<64x8xf32> to vector<8xf32>
    %10 = vector.shape_cast %9 : vector<8xf32> to vector<1x8xf32>
    %11 = arith.mulf %6, %6 : vector<64x8xf32>
    %cst_10 = arith.constant dense<0.000000e+00> : vector<8xf32>
    %12 = vector.multi_reduction <add>, %11, %cst_10 [0] : vector<64x8xf32> to vector<8xf32>
    %13 = vector.shape_cast %12 : vector<8xf32> to vector<1x8xf32>
    %14 = tpu.concatenate %10, %13 in 1 : vector<1x8xf32>, vector<1x8xf32> -> vector<1x16xf32>
    %15 = vector.shape_cast %14 : vector<1x16xf32> to vector<1x1x16xf32>
    %c0_11 = arith.constant 0 : index
    %c0_12 = arith.constant 0 : index
    %c0_13 = arith.constant 0 : index
    %16 = vector.load %arg5[%c0_11, %c0_12, %c0_13] : memref<1x1x16xf32, #tpu.memory_space<vmem>>, vector<1x1x16xf32>
    tpu.vector_store %arg5[%c0_11, %c0_12, %c0_13], %15 {strides = array<i32>} : memref<1x1x16xf32, #tpu.memory_space<vmem>>, vector<1x1x16xf32>,
    return
  }
  func.func @transform_0(%arg0: i32) -> (i32, i32, i32) {
    %c0_i32 = arith.constant 0 : i32
    %c0_i32_0 = arith.constant 0 : i32
    %c0_i32_1 = arith.constant 0 : i32
    return %arg0, %c0_i32, %c0_i32_0 : i32, i32, i32
  }
  func.func @transform_1(%arg0: i32) -> (i32, i32) {
    %c0_i32 = arith.constant 0 : i32
    %c0_i32_0 = arith.constant 0 : i32
    %c0_i32_1 = arith.constant 0 : i32
    return %c0_i32, %c0_i32_0 : i32, i32
  }
  func.func @transform_2(%arg0: i32) -> (i32, i32) {
    %c0_i32 = arith.constant 0 : i32
    %c0_i32_0 = arith.constant 0 : i32
    %c0_i32_1 = arith.constant 0 : i32
    return %c0_i32, %c0_i32_0 : i32, i32
  }
  func.func @transform_3(%arg0: i32) -> (i32, i32, i32) {
    %c0_i32 = arith.constant 0 : i32
    %c0_i32_0 = arith.constant 0 : i32
    %c0_i32_1 = arith.constant 0 : i32
    return %arg0, %c0_i32, %c0_i32_0 : i32, i32, i32
  }
  func.func @transform_4(%arg0: i32) -> (i32, i32, i32) {
    %c0_i32 = arith.constant 0 : i32
    %c0_i32_0 = arith.constant 0 : i32
    %c0_i32_1 = arith.constant 0 : i32
    return %arg0, %c0_i32, %c0_i32_0 : i32, i32, i32
  }
}

module attributes {stable_mosaic.version = 11 : i64} {
  func.func @kernel(%arg0: i32, %arg1: i32, %arg2: memref<1x8x8x8xbf16, #tpu.memory_space<vmem>>, %arg3: memref<1x1x8x8xbf16, #tpu.memory_space<vmem>>, %arg4: memref<1x1x8x8xbf16, #tpu.memory_space<vmem>>, %arg5: memref<1x8xf32, #tpu.memory_space<vmem>>, %arg6: memref<1x8xf32, #tpu.memory_space<vmem>>, %arg7: memref<9x8x8xbf16, #tpu.memory_space<vmem>>, %arg8: memref<1x8x8x8xf32, #tpu.memory_space<vmem>>, %arg9: memref<1x8x64xf32, #tpu.memory_space<vmem>>) attributes {dimension_semantics = [#tpu.dimension_semantics<parallel>, #tpu.dimension_semantics<parallel>], iteration_bounds = array<i64: 2, 1>, scalar_prefetch = 0 : i64, scratch_operands = 0 : i64, tpu.core_type = #tpu.core_type<tc>, window_params = [{transform_indices = @transform_0, window_bounds = array<i64: 1, 8, 8, 8>}, {transform_indices = @transform_1, window_bounds = array<i64: 1, 1, 8, 8>}, {transform_indices = @transform_2, window_bounds = array<i64: 1, 1, 8, 8>}, {pipeline_mode = #tpu.pipeline_mode<synchronous>, transform_indices = @transform_3, window_bounds = array<i64: 1, 8>}, {pipeline_mode = #tpu.pipeline_mode<synchronous>, transform_indices = @transform_4, window_bounds = array<i64: 1, 8>}, {pipeline_mode = #tpu.pipeline_mode<synchronous>, transform_indices = @transform_5, window_bounds = array<i64: 9, 8, 8>}, {transform_indices = @transform_6, window_bounds = array<i64: 1, 8, 8, 8>}, {transform_indices = @transform_7, window_bounds = array<i64: 1, 8, 64>}]} {
    %c0 = arith.constant 0 : index
    %c0_0 = arith.constant 0 : index
    %0 = vector.load %arg5[%c0, %c0_0] : memref<1x8xf32, #tpu.memory_space<vmem>>, vector<1x8xf32>
    %1 = vector.shape_cast %0 : vector<1x8xf32> to vector<1x1x8xf32>
    %c0_1 = arith.constant 0 : index
    %c0_2 = arith.constant 0 : index
    %2 = vector.load %arg6[%c0_1, %c0_2] : memref<1x8xf32, #tpu.memory_space<vmem>>, vector<1x8xf32>
    %3 = vector.shape_cast %2 : vector<1x8xf32> to vector<1x1x8xf32>
    %c0_3 = arith.constant 0 : index
    %c0_4 = arith.constant 0 : index
    %c0_5 = arith.constant 0 : index
    %c0_6 = arith.constant 0 : index
    %4 = vector.load %arg2[%c0_3, %c0_4, %c0_5, %c0_6] : memref<1x8x8x8xbf16, #tpu.memory_space<vmem>>, vector<1x8x8x8xbf16>
    %5 = vector.shape_cast %4 : vector<1x8x8x8xbf16> to vector<8x8x8xbf16>
    %6 = arith.extf %5 : vector<8x8x8xbf16> to vector<8x8x8xf32>
    %7 = vector.broadcast %1 : vector<1x1x8xf32> to vector<8x8x8xf32>
    %8 = arith.mulf %6, %7 : vector<8x8x8xf32>
    %9 = vector.broadcast %3 : vector<1x1x8xf32> to vector<8x8x8xf32>
    %10 = arith.addf %8, %9 : vector<8x8x8xf32>
    %cst = arith.constant 0.000000e+00 : f32
    %11 = vector.broadcast %cst : f32 to vector<8x8x8xf32>
    %12 = arith.maximumf %10, %11 : vector<8x8x8xf32>
    %c0_7 = arith.constant 0 : index
    %c0_8 = arith.constant 0 : index
    %c0_9 = arith.constant 0 : index
    %c0_10 = arith.constant 0 : index
    %13 = vector.load %arg3[%c0_7, %c0_8, %c0_9, %c0_10] : memref<1x1x8x8xbf16, #tpu.memory_space<vmem>>, vector<1x1x8x8xbf16>
    %14 = vector.shape_cast %13 : vector<1x1x8x8xbf16> to vector<1x8x8xbf16>
    %15 = arith.extf %14 : vector<1x8x8xbf16> to vector<1x8x8xf32>
    %16 = vector.broadcast %1 : vector<1x1x8xf32> to vector<1x8x8xf32>
    %17 = arith.mulf %15, %16 : vector<1x8x8xf32>
    %18 = vector.broadcast %3 : vector<1x1x8xf32> to vector<1x8x8xf32>
    %19 = arith.addf %17, %18 : vector<1x8x8xf32>
    %cst_11 = arith.constant 0.000000e+00 : f32
    %20 = vector.broadcast %cst_11 : f32 to vector<1x8x8xf32>
    %21 = arith.maximumf %19, %20 : vector<1x8x8xf32>
    %c0_12 = arith.constant 0 : index
    %c0_13 = arith.constant 0 : index
    %c0_14 = arith.constant 0 : index
    %c0_15 = arith.constant 0 : index
    %22 = vector.load %arg4[%c0_12, %c0_13, %c0_14, %c0_15] : memref<1x1x8x8xbf16, #tpu.memory_space<vmem>>, vector<1x1x8x8xbf16>
    %23 = vector.shape_cast %22 : vector<1x1x8x8xbf16> to vector<1x8x8xbf16>
    %24 = arith.extf %23 : vector<1x8x8xbf16> to vector<1x8x8xf32>
    %25 = vector.broadcast %1 : vector<1x1x8xf32> to vector<1x8x8xf32>
    %26 = arith.mulf %24, %25 : vector<1x8x8xf32>
    %27 = vector.broadcast %3 : vector<1x1x8xf32> to vector<1x8x8xf32>
    %28 = arith.addf %26, %27 : vector<1x8x8xf32>
    %cst_16 = arith.constant 0.000000e+00 : f32
    %29 = vector.broadcast %cst_16 : f32 to vector<1x8x8xf32>
    %30 = arith.maximumf %28, %29 : vector<1x8x8xf32>
    %c0_i32 = arith.constant 0 : i32
    %31 = arith.cmpi sgt, %arg1, %c0_i32 : i32
    %cst_17 = arith.constant 0.000000e+00 : f32
    %32 = vector.broadcast %cst_17 : f32 to vector<1x8x8xf32>
    %33 = arith.select %31, %21, %32 : vector<1x8x8xf32>
    %c0_i32_18 = arith.constant 0 : i32
    %34 = arith.cmpi slt, %arg1, %c0_i32_18 : i32
    %cst_19 = arith.constant 0.000000e+00 : f32
    %35 = vector.broadcast %cst_19 : f32 to vector<1x8x8xf32>
    %36 = arith.select %34, %30, %35 : vector<1x8x8xf32>
    %37 = tpu.concatenate %33, %12, %36 in 0 : vector<1x8x8xf32>, vector<8x8x8xf32>, vector<1x8x8xf32> -> vector<10x8x8xf32>
    %cst_20 = arith.constant 0.000000e+00 : f32
    %38 = vector.broadcast %cst_20 : f32 to vector<10x1x8xf32>
    %39 = tpu.concatenate %38, %37, %38 in 1 : vector<10x1x8xf32>, vector<10x8x8xf32>, vector<10x1x8xf32> -> vector<10x10x8xf32>
    %cst_21 = arith.constant 0.000000e+00 : f32
    %40 = vector.broadcast %cst_21 : f32 to vector<64x8xf32>
    %41 = vector.extract_strided_slice %39 {offsets = [0, 0, 0], sizes = [8, 8, 8], strides = [1, 1, 1]} : vector<10x10x8xf32> to vector<8x8x8xf32>
    %42 = vector.shape_cast %41 : vector<8x8x8xf32> to vector<64x8xf32>
    %43 = arith.truncf %42 : vector<64x8xf32> to vector<64x8xbf16>
    %c0_22 = arith.constant 0 : index
    %c0_23 = arith.constant 0 : index
    %c0_24 = arith.constant 0 : index
    %44 = vector.load %arg7[%c0_22, %c0_23, %c0_24] : memref<9x8x8xbf16, #tpu.memory_space<vmem>>, vector<1x8x8xbf16>
    %45 = vector.shape_cast %44 : vector<1x8x8xbf16> to vector<8x8xbf16>
    %cst_25 = arith.constant dense<0.000000e+00> : vector<64x8xf32>
    %46 = tpu.matmul %43, %45, %cst_25 {dimension_numbers = #tpu.dot_dimension_numbers<[1], [0], [0], [1], [0, 0, 1, 1], [], []>} : vector<64x8xbf16>, vector<8x8xbf16>, vector<64x8xf32> -> vector<64x8xf32>
    %47 = arith.addf %40, %46 : vector<64x8xf32>
    %48 = vector.extract_strided_slice %39 {offsets = [0, 1, 0], sizes = [8, 8, 8], strides = [1, 1, 1]} : vector<10x10x8xf32> to vector<8x8x8xf32>
    %49 = vector.shape_cast %48 : vector<8x8x8xf32> to vector<64x8xf32>
    %50 = arith.truncf %49 : vector<64x8xf32> to vector<64x8xbf16>
    %c1 = arith.constant 1 : index
    %c0_26 = arith.constant 0 : index
    %c0_27 = arith.constant 0 : index
    %51 = vector.load %arg7[%c1, %c0_26, %c0_27] : memref<9x8x8xbf16, #tpu.memory_space<vmem>>, vector<1x8x8xbf16>
    %52 = vector.shape_cast %51 : vector<1x8x8xbf16> to vector<8x8xbf16>
    %cst_28 = arith.constant dense<0.000000e+00> : vector<64x8xf32>
    %53 = tpu.matmul %50, %52, %cst_28 {dimension_numbers = #tpu.dot_dimension_numbers<[1], [0], [0], [1], [0, 0, 1, 1], [], []>} : vector<64x8xbf16>, vector<8x8xbf16>, vector<64x8xf32> -> vector<64x8xf32>
    %54 = arith.addf %47, %53 : vector<64x8xf32>
    %55 = vector.extract_strided_slice %39 {offsets = [0, 2, 0], sizes = [8, 8, 8], strides = [1, 1, 1]} : vector<10x10x8xf32> to vector<8x8x8xf32>
    %56 = vector.shape_cast %55 : vector<8x8x8xf32> to vector<64x8xf32>
    %57 = arith.truncf %56 : vector<64x8xf32> to vector<64x8xbf16>
    %c2 = arith.constant 2 : index
    %c0_29 = arith.constant 0 : index
    %c0_30 = arith.constant 0 : index
    %58 = vector.load %arg7[%c2, %c0_29, %c0_30] : memref<9x8x8xbf16, #tpu.memory_space<vmem>>, vector<1x8x8xbf16>
    %59 = vector.shape_cast %58 : vector<1x8x8xbf16> to vector<8x8xbf16>
    %cst_31 = arith.constant dense<0.000000e+00> : vector<64x8xf32>
    %60 = tpu.matmul %57, %59, %cst_31 {dimension_numbers = #tpu.dot_dimension_numbers<[1], [0], [0], [1], [0, 0, 1, 1], [], []>} : vector<64x8xbf16>, vector<8x8xbf16>, vector<64x8xf32> -> vector<64x8xf32>
    %61 = arith.addf %54, %60 : vector<64x8xf32>
    %62 = vector.extract_strided_slice %39 {offsets = [1, 0, 0], sizes = [8, 8, 8], strides = [1, 1, 1]} : vector<10x10x8xf32> to vector<8x8x8xf32>
    %63 = vector.shape_cast %62 : vector<8x8x8xf32> to vector<64x8xf32>
    %64 = arith.truncf %63 : vector<64x8xf32> to vector<64x8xbf16>
    %c3 = arith.constant 3 : index
    %c0_32 = arith.constant 0 : index
    %c0_33 = arith.constant 0 : index
    %65 = vector.load %arg7[%c3, %c0_32, %c0_33] : memref<9x8x8xbf16, #tpu.memory_space<vmem>>, vector<1x8x8xbf16>
    %66 = vector.shape_cast %65 : vector<1x8x8xbf16> to vector<8x8xbf16>
    %cst_34 = arith.constant dense<0.000000e+00> : vector<64x8xf32>
    %67 = tpu.matmul %64, %66, %cst_34 {dimension_numbers = #tpu.dot_dimension_numbers<[1], [0], [0], [1], [0, 0, 1, 1], [], []>} : vector<64x8xbf16>, vector<8x8xbf16>, vector<64x8xf32> -> vector<64x8xf32>
    %68 = arith.addf %61, %67 : vector<64x8xf32>
    %69 = vector.extract_strided_slice %39 {offsets = [1, 1, 0], sizes = [8, 8, 8], strides = [1, 1, 1]} : vector<10x10x8xf32> to vector<8x8x8xf32>
    %70 = vector.shape_cast %69 : vector<8x8x8xf32> to vector<64x8xf32>
    %71 = arith.truncf %70 : vector<64x8xf32> to vector<64x8xbf16>
    %c4 = arith.constant 4 : index
    %c0_35 = arith.constant 0 : index
    %c0_36 = arith.constant 0 : index
    %72 = vector.load %arg7[%c4, %c0_35, %c0_36] : memref<9x8x8xbf16, #tpu.memory_space<vmem>>, vector<1x8x8xbf16>
    %73 = vector.shape_cast %72 : vector<1x8x8xbf16> to vector<8x8xbf16>
    %cst_37 = arith.constant dense<0.000000e+00> : vector<64x8xf32>
    %74 = tpu.matmul %71, %73, %cst_37 {dimension_numbers = #tpu.dot_dimension_numbers<[1], [0], [0], [1], [0, 0, 1, 1], [], []>} : vector<64x8xbf16>, vector<8x8xbf16>, vector<64x8xf32> -> vector<64x8xf32>
    %75 = arith.addf %68, %74 : vector<64x8xf32>
    %76 = vector.extract_strided_slice %39 {offsets = [1, 2, 0], sizes = [8, 8, 8], strides = [1, 1, 1]} : vector<10x10x8xf32> to vector<8x8x8xf32>
    %77 = vector.shape_cast %76 : vector<8x8x8xf32> to vector<64x8xf32>
    %78 = arith.truncf %77 : vector<64x8xf32> to vector<64x8xbf16>
    %c5 = arith.constant 5 : index
    %c0_38 = arith.constant 0 : index
    %c0_39 = arith.constant 0 : index
    %79 = vector.load %arg7[%c5, %c0_38, %c0_39] : memref<9x8x8xbf16, #tpu.memory_space<vmem>>, vector<1x8x8xbf16>
    %80 = vector.shape_cast %79 : vector<1x8x8xbf16> to vector<8x8xbf16>
    %cst_40 = arith.constant dense<0.000000e+00> : vector<64x8xf32>
    %81 = tpu.matmul %78, %80, %cst_40 {dimension_numbers = #tpu.dot_dimension_numbers<[1], [0], [0], [1], [0, 0, 1, 1], [], []>} : vector<64x8xbf16>, vector<8x8xbf16>, vector<64x8xf32> -> vector<64x8xf32>
    %82 = arith.addf %75, %81 : vector<64x8xf32>
    %83 = vector.extract_strided_slice %39 {offsets = [2, 0, 0], sizes = [8, 8, 8], strides = [1, 1, 1]} : vector<10x10x8xf32> to vector<8x8x8xf32>
    %84 = vector.shape_cast %83 : vector<8x8x8xf32> to vector<64x8xf32>
    %85 = arith.truncf %84 : vector<64x8xf32> to vector<64x8xbf16>
    %c6 = arith.constant 6 : index
    %c0_41 = arith.constant 0 : index
    %c0_42 = arith.constant 0 : index
    %86 = vector.load %arg7[%c6, %c0_41, %c0_42] : memref<9x8x8xbf16, #tpu.memory_space<vmem>>, vector<1x8x8xbf16>
    %87 = vector.shape_cast %86 : vector<1x8x8xbf16> to vector<8x8xbf16>
    %cst_43 = arith.constant dense<0.000000e+00> : vector<64x8xf32>
    %88 = tpu.matmul %85, %87, %cst_43 {dimension_numbers = #tpu.dot_dimension_numbers<[1], [0], [0], [1], [0, 0, 1, 1], [], []>} : vector<64x8xbf16>, vector<8x8xbf16>, vector<64x8xf32> -> vector<64x8xf32>
    %89 = arith.addf %82, %88 : vector<64x8xf32>
    %90 = vector.extract_strided_slice %39 {offsets = [2, 1, 0], sizes = [8, 8, 8], strides = [1, 1, 1]} : vector<10x10x8xf32> to vector<8x8x8xf32>
    %91 = vector.shape_cast %90 : vector<8x8x8xf32> to vector<64x8xf32>
    %92 = arith.truncf %91 : vector<64x8xf32> to vector<64x8xbf16>
    %c7 = arith.constant 7 : index
    %c0_44 = arith.constant 0 : index
    %c0_45 = arith.constant 0 : index
    %93 = vector.load %arg7[%c7, %c0_44, %c0_45] : memref<9x8x8xbf16, #tpu.memory_space<vmem>>, vector<1x8x8xbf16>
    %94 = vector.shape_cast %93 : vector<1x8x8xbf16> to vector<8x8xbf16>
    %cst_46 = arith.constant dense<0.000000e+00> : vector<64x8xf32>
    %95 = tpu.matmul %92, %94, %cst_46 {dimension_numbers = #tpu.dot_dimension_numbers<[1], [0], [0], [1], [0, 0, 1, 1], [], []>} : vector<64x8xbf16>, vector<8x8xbf16>, vector<64x8xf32> -> vector<64x8xf32>
    %96 = arith.addf %89, %95 : vector<64x8xf32>
    %97 = vector.extract_strided_slice %39 {offsets = [2, 2, 0], sizes = [8, 8, 8], strides = [1, 1, 1]} : vector<10x10x8xf32> to vector<8x8x8xf32>
    %98 = vector.shape_cast %97 : vector<8x8x8xf32> to vector<64x8xf32>
    %99 = arith.truncf %98 : vector<64x8xf32> to vector<64x8xbf16>
    %c8 = arith.constant 8 : index
    %c0_47 = arith.constant 0 : index
    %c0_48 = arith.constant 0 : index
    %100 = vector.load %arg7[%c8, %c0_47, %c0_48] : memref<9x8x8xbf16, #tpu.memory_space<vmem>>, vector<1x8x8xbf16>
    %101 = vector.shape_cast %100 : vector<1x8x8xbf16> to vector<8x8xbf16>
    %cst_49 = arith.constant dense<0.000000e+00> : vector<64x8xf32>
    %102 = tpu.matmul %99, %101, %cst_49 {dimension_numbers = #tpu.dot_dimension_numbers<[1], [0], [0], [1], [0, 0, 1, 1], [], []>} : vector<64x8xbf16>, vector<8x8xbf16>, vector<64x8xf32> -> vector<64x8xf32>
    %103 = arith.addf %96, %102 : vector<64x8xf32>
    %c0_50 = arith.constant 0 : index
    %c0_51 = arith.constant 0 : index
    %c0_52 = arith.constant 0 : index
    %c0_53 = arith.constant 0 : index
    %104 = vector.load %arg8[%c0_50, %c0_51, %c0_52, %c0_53] : memref<1x8x8x8xf32, #tpu.memory_space<vmem>>, vector<1x8x8x8xf32>
    %105 = vector.shape_cast %104 : vector<1x8x8x8xf32> to vector<64x8xf32>
    %106 = arith.addf %103, %105 : vector<64x8xf32>
    %107 = tpu.transpose %106, [1, 0] : vector<64x8xf32> -> vector<8x64xf32>
    %108 = vector.shape_cast %107 : vector<8x64xf32> to vector<1x8x64xf32>
    %c0_54 = arith.constant 0 : index
    %c0_55 = arith.constant 0 : index
    %c0_56 = arith.constant 0 : index
    %109 = vector.load %arg9[%c0_54, %c0_55, %c0_56] : memref<1x8x64xf32, #tpu.memory_space<vmem>>, vector<1x8x64xf32>
    tpu.vector_store %arg9[%c0_54, %c0_55, %c0_56], %108 {strides = array<i32>} : memref<1x8x64xf32, #tpu.memory_space<vmem>>, vector<1x8x64xf32>,
    return
  }
  func.func @transform_0(%arg0: i32, %arg1: i32) -> (i32, i32, i32, i32) {
    %c0_i32 = arith.constant 0 : i32
    %c0_i32_0 = arith.constant 0 : i32
    %c0_i32_1 = arith.constant 0 : i32
    return %arg0, %arg1, %c0_i32, %c0_i32_0 : i32, i32, i32, i32
  }
  func.func @transform_1(%arg0: i32, %arg1: i32) -> (i32, i32, i32, i32) {
    %c8_i32 = arith.constant 8 : i32
    %0 = arith.muli %arg1, %c8_i32 : i32
    %c1_i32 = arith.constant 1 : i32
    %1 = arith.subi %0, %c1_i32 : i32
    %c0_i32 = arith.constant 0 : i32
    %2 = arith.maxsi %1, %c0_i32 : i32
    %c0_i32_0 = arith.constant 0 : i32
    %c0_i32_1 = arith.constant 0 : i32
    %c0_i32_2 = arith.constant 0 : i32
    return %arg0, %2, %c0_i32_0, %c0_i32_1 : i32, i32, i32, i32
  }
  func.func @transform_2(%arg0: i32, %arg1: i32) -> (i32, i32, i32, i32) {
    %c1_i32 = arith.constant 1 : i32
    %0 = arith.addi %arg1, %c1_i32 : i32
    %c8_i32 = arith.constant 8 : i32
    %1 = arith.muli %0, %c8_i32 : i32
    %c7_i32 = arith.constant 7 : i32
    %2 = arith.minsi %1, %c7_i32 : i32
    %c0_i32 = arith.constant 0 : i32
    %c0_i32_0 = arith.constant 0 : i32
    %c0_i32_1 = arith.constant 0 : i32
    return %arg0, %2, %c0_i32, %c0_i32_0 : i32, i32, i32, i32
  }
  func.func @transform_3(%arg0: i32, %arg1: i32) -> (i32, i32) {
    %c0_i32 = arith.constant 0 : i32
    %c0_i32_0 = arith.constant 0 : i32
    %c0_i32_1 = arith.constant 0 : i32
    return %c0_i32, %c0_i32_0 : i32, i32
  }
  func.func @transform_4(%arg0: i32, %arg1: i32) -> (i32, i32) {
    %c0_i32 = arith.constant 0 : i32
    %c0_i32_0 = arith.constant 0 : i32
    %c0_i32_1 = arith.constant 0 : i32
    return %c0_i32, %c0_i32_0 : i32, i32
  }
  func.func @transform_5(%arg0: i32, %arg1: i32) -> (i32, i32, i32) {
    %c0_i32 = arith.constant 0 : i32
    %c0_i32_0 = arith.constant 0 : i32
    %c0_i32_1 = arith.constant 0 : i32
    %c0_i32_2 = arith.constant 0 : i32
    return %c0_i32, %c0_i32_0, %c0_i32_1 : i32, i32, i32
  }
  func.func @transform_6(%arg0: i32, %arg1: i32) -> (i32, i32, i32, i32) {
    %c0_i32 = arith.constant 0 : i32
    %c0_i32_0 = arith.constant 0 : i32
    %c0_i32_1 = arith.constant 0 : i32
    return %arg0, %arg1, %c0_i32, %c0_i32_0 : i32, i32, i32, i32
  }
  func.func @transform_7(%arg0: i32, %arg1: i32) -> (i32, i32, i32) {
    %c0_i32 = arith.constant 0 : i32
    %c0_i32_0 = arith.constant 0 : i32
    return %arg0, %c0_i32, %arg1 : i32, i32, i32
  }
}

module attributes {stable_mosaic.version = 11 : i64} {
  func.func @kernel(%arg0: i32, %arg1: i32, %arg2: memref<1x4x8x8xf32, #tpu.memory_space<vmem>>, %arg3: memref<1x1x8x8xf32, #tpu.memory_space<vmem>>, %arg4: memref<1x1x8x8xf32, #tpu.memory_space<vmem>>, %arg5: memref<1x8xf32, #tpu.memory_space<vmem>>, %arg6: memref<1x8xf32, #tpu.memory_space<vmem>>, %arg7: memref<9x8x8xbf16, #tpu.memory_space<vmem>>, %arg8: memref<1x4x8x8xbf16, #tpu.memory_space<vmem>>, %arg9: memref<1x1x16xf32, #tpu.memory_space<vmem>>) attributes {dimension_semantics = [#tpu.dimension_semantics<parallel>, #tpu.dimension_semantics<parallel>], iteration_bounds = array<i64: 2, 2>, scalar_prefetch = 0 : i64, scratch_operands = 0 : i64, tpu.core_type = #tpu.core_type<tc>, window_params = [{transform_indices = @transform_0, window_bounds = array<i64: 1, 4, 8, 8>}, {transform_indices = @transform_1, window_bounds = array<i64: 1, 1, 8, 8>}, {transform_indices = @transform_2, window_bounds = array<i64: 1, 1, 8, 8>}, {pipeline_mode = #tpu.pipeline_mode<synchronous>, transform_indices = @transform_3, window_bounds = array<i64: 1, 8>}, {pipeline_mode = #tpu.pipeline_mode<synchronous>, transform_indices = @transform_4, window_bounds = array<i64: 1, 8>}, {pipeline_mode = #tpu.pipeline_mode<synchronous>, transform_indices = @transform_5, window_bounds = array<i64: 9, 8, 8>}, {transform_indices = @transform_6, window_bounds = array<i64: 1, 4, 8, 8>}, {transform_indices = @transform_7, window_bounds = array<i64: 1, 1, 16>}]} {
    %c0 = arith.constant 0 : index
    %c0_0 = arith.constant 0 : index
    %0 = vector.load %arg5[%c0, %c0_0] : memref<1x8xf32, #tpu.memory_space<vmem>>, vector<1x8xf32>
    %1 = vector.shape_cast %0 : vector<1x8xf32> to vector<1x1x8xf32>
    %c0_1 = arith.constant 0 : index
    %c0_2 = arith.constant 0 : index
    %2 = vector.load %arg6[%c0_1, %c0_2] : memref<1x8xf32, #tpu.memory_space<vmem>>, vector<1x8xf32>
    %3 = vector.shape_cast %2 : vector<1x8xf32> to vector<1x1x8xf32>
    %c0_3 = arith.constant 0 : index
    %c0_4 = arith.constant 0 : index
    %c0_5 = arith.constant 0 : index
    %c0_6 = arith.constant 0 : index
    %4 = vector.load %arg2[%c0_3, %c0_4, %c0_5, %c0_6] : memref<1x4x8x8xf32, #tpu.memory_space<vmem>>, vector<1x4x8x8xf32>
    %5 = vector.shape_cast %4 : vector<1x4x8x8xf32> to vector<4x8x8xf32>
    %6 = vector.broadcast %1 : vector<1x1x8xf32> to vector<4x8x8xf32>
    %7 = arith.mulf %5, %6 : vector<4x8x8xf32>
    %8 = vector.broadcast %3 : vector<1x1x8xf32> to vector<4x8x8xf32>
    %9 = arith.addf %7, %8 : vector<4x8x8xf32>
    %cst = arith.constant 0.000000e+00 : f32
    %10 = vector.broadcast %cst : f32 to vector<4x8x8xf32>
    %11 = arith.maximumf %9, %10 : vector<4x8x8xf32>
    %c0_7 = arith.constant 0 : index
    %c0_8 = arith.constant 0 : index
    %c0_9 = arith.constant 0 : index
    %c0_10 = arith.constant 0 : index
    %12 = vector.load %arg3[%c0_7, %c0_8, %c0_9, %c0_10] : memref<1x1x8x8xf32, #tpu.memory_space<vmem>>, vector<1x1x8x8xf32>
    %13 = vector.shape_cast %12 : vector<1x1x8x8xf32> to vector<1x8x8xf32>
    %14 = vector.broadcast %1 : vector<1x1x8xf32> to vector<1x8x8xf32>
    %15 = arith.mulf %13, %14 : vector<1x8x8xf32>
    %16 = vector.broadcast %3 : vector<1x1x8xf32> to vector<1x8x8xf32>
    %17 = arith.addf %15, %16 : vector<1x8x8xf32>
    %cst_11 = arith.constant 0.000000e+00 : f32
    %18 = vector.broadcast %cst_11 : f32 to vector<1x8x8xf32>
    %19 = arith.maximumf %17, %18 : vector<1x8x8xf32>
    %c0_12 = arith.constant 0 : index
    %c0_13 = arith.constant 0 : index
    %c0_14 = arith.constant 0 : index
    %c0_15 = arith.constant 0 : index
    %20 = vector.load %arg4[%c0_12, %c0_13, %c0_14, %c0_15] : memref<1x1x8x8xf32, #tpu.memory_space<vmem>>, vector<1x1x8x8xf32>
    %21 = vector.shape_cast %20 : vector<1x1x8x8xf32> to vector<1x8x8xf32>
    %22 = vector.broadcast %1 : vector<1x1x8xf32> to vector<1x8x8xf32>
    %23 = arith.mulf %21, %22 : vector<1x8x8xf32>
    %24 = vector.broadcast %3 : vector<1x1x8xf32> to vector<1x8x8xf32>
    %25 = arith.addf %23, %24 : vector<1x8x8xf32>
    %cst_16 = arith.constant 0.000000e+00 : f32
    %26 = vector.broadcast %cst_16 : f32 to vector<1x8x8xf32>
    %27 = arith.maximumf %25, %26 : vector<1x8x8xf32>
    %c0_i32 = arith.constant 0 : i32
    %28 = arith.cmpi sgt, %arg1, %c0_i32 : i32
    %cst_17 = arith.constant 0.000000e+00 : f32
    %29 = vector.broadcast %cst_17 : f32 to vector<1x8x8xf32>
    %30 = arith.select %28, %19, %29 : vector<1x8x8xf32>
    %c1_i32 = arith.constant 1 : i32
    %31 = arith.cmpi slt, %arg1, %c1_i32 : i32
    %cst_18 = arith.constant 0.000000e+00 : f32
    %32 = vector.broadcast %cst_18 : f32 to vector<1x8x8xf32>
    %33 = arith.select %31, %27, %32 : vector<1x8x8xf32>
    %34 = tpu.concatenate %30, %11, %33 in 0 : vector<1x8x8xf32>, vector<4x8x8xf32>, vector<1x8x8xf32> -> vector<6x8x8xf32>
    %cst_19 = arith.constant 0.000000e+00 : f32
    %35 = vector.broadcast %cst_19 : f32 to vector<6x1x8xf32>
    %36 = tpu.concatenate %35, %34, %35 in 1 : vector<6x1x8xf32>, vector<6x8x8xf32>, vector<6x1x8xf32> -> vector<6x10x8xf32>
    %cst_20 = arith.constant 0.000000e+00 : f32
    %37 = vector.broadcast %cst_20 : f32 to vector<32x8xf32>
    %38 = vector.extract_strided_slice %36 {offsets = [0, 0, 0], sizes = [4, 8, 8], strides = [1, 1, 1]} : vector<6x10x8xf32> to vector<4x8x8xf32>
    %39 = vector.shape_cast %38 : vector<4x8x8xf32> to vector<32x8xf32>
    %40 = arith.truncf %39 : vector<32x8xf32> to vector<32x8xbf16>
    %c0_21 = arith.constant 0 : index
    %c0_22 = arith.constant 0 : index
    %c0_23 = arith.constant 0 : index
    %41 = vector.load %arg7[%c0_21, %c0_22, %c0_23] : memref<9x8x8xbf16, #tpu.memory_space<vmem>>, vector<1x8x8xbf16>
    %42 = vector.shape_cast %41 : vector<1x8x8xbf16> to vector<8x8xbf16>
    %cst_24 = arith.constant dense<0.000000e+00> : vector<32x8xf32>
    %43 = tpu.matmul %40, %42, %cst_24 {dimension_numbers = #tpu.dot_dimension_numbers<[1], [0], [0], [1], [0, 0, 1, 1], [], []>} : vector<32x8xbf16>, vector<8x8xbf16>, vector<32x8xf32> -> vector<32x8xf32>
    %44 = arith.addf %37, %43 : vector<32x8xf32>
    %45 = vector.extract_strided_slice %36 {offsets = [0, 1, 0], sizes = [4, 8, 8], strides = [1, 1, 1]} : vector<6x10x8xf32> to vector<4x8x8xf32>
    %46 = vector.shape_cast %45 : vector<4x8x8xf32> to vector<32x8xf32>
    %47 = arith.truncf %46 : vector<32x8xf32> to vector<32x8xbf16>
    %c1 = arith.constant 1 : index
    %c0_25 = arith.constant 0 : index
    %c0_26 = arith.constant 0 : index
    %48 = vector.load %arg7[%c1, %c0_25, %c0_26] : memref<9x8x8xbf16, #tpu.memory_space<vmem>>, vector<1x8x8xbf16>
    %49 = vector.shape_cast %48 : vector<1x8x8xbf16> to vector<8x8xbf16>
    %cst_27 = arith.constant dense<0.000000e+00> : vector<32x8xf32>
    %50 = tpu.matmul %47, %49, %cst_27 {dimension_numbers = #tpu.dot_dimension_numbers<[1], [0], [0], [1], [0, 0, 1, 1], [], []>} : vector<32x8xbf16>, vector<8x8xbf16>, vector<32x8xf32> -> vector<32x8xf32>
    %51 = arith.addf %44, %50 : vector<32x8xf32>
    %52 = vector.extract_strided_slice %36 {offsets = [0, 2, 0], sizes = [4, 8, 8], strides = [1, 1, 1]} : vector<6x10x8xf32> to vector<4x8x8xf32>
    %53 = vector.shape_cast %52 : vector<4x8x8xf32> to vector<32x8xf32>
    %54 = arith.truncf %53 : vector<32x8xf32> to vector<32x8xbf16>
    %c2 = arith.constant 2 : index
    %c0_28 = arith.constant 0 : index
    %c0_29 = arith.constant 0 : index
    %55 = vector.load %arg7[%c2, %c0_28, %c0_29] : memref<9x8x8xbf16, #tpu.memory_space<vmem>>, vector<1x8x8xbf16>
    %56 = vector.shape_cast %55 : vector<1x8x8xbf16> to vector<8x8xbf16>
    %cst_30 = arith.constant dense<0.000000e+00> : vector<32x8xf32>
    %57 = tpu.matmul %54, %56, %cst_30 {dimension_numbers = #tpu.dot_dimension_numbers<[1], [0], [0], [1], [0, 0, 1, 1], [], []>} : vector<32x8xbf16>, vector<8x8xbf16>, vector<32x8xf32> -> vector<32x8xf32>
    %58 = arith.addf %51, %57 : vector<32x8xf32>
    %59 = vector.extract_strided_slice %36 {offsets = [1, 0, 0], sizes = [4, 8, 8], strides = [1, 1, 1]} : vector<6x10x8xf32> to vector<4x8x8xf32>
    %60 = vector.shape_cast %59 : vector<4x8x8xf32> to vector<32x8xf32>
    %61 = arith.truncf %60 : vector<32x8xf32> to vector<32x8xbf16>
    %c3 = arith.constant 3 : index
    %c0_31 = arith.constant 0 : index
    %c0_32 = arith.constant 0 : index
    %62 = vector.load %arg7[%c3, %c0_31, %c0_32] : memref<9x8x8xbf16, #tpu.memory_space<vmem>>, vector<1x8x8xbf16>
    %63 = vector.shape_cast %62 : vector<1x8x8xbf16> to vector<8x8xbf16>
    %cst_33 = arith.constant dense<0.000000e+00> : vector<32x8xf32>
    %64 = tpu.matmul %61, %63, %cst_33 {dimension_numbers = #tpu.dot_dimension_numbers<[1], [0], [0], [1], [0, 0, 1, 1], [], []>} : vector<32x8xbf16>, vector<8x8xbf16>, vector<32x8xf32> -> vector<32x8xf32>
    %65 = arith.addf %58, %64 : vector<32x8xf32>
    %66 = vector.extract_strided_slice %36 {offsets = [1, 1, 0], sizes = [4, 8, 8], strides = [1, 1, 1]} : vector<6x10x8xf32> to vector<4x8x8xf32>
    %67 = vector.shape_cast %66 : vector<4x8x8xf32> to vector<32x8xf32>
    %68 = arith.truncf %67 : vector<32x8xf32> to vector<32x8xbf16>
    %c4 = arith.constant 4 : index
    %c0_34 = arith.constant 0 : index
    %c0_35 = arith.constant 0 : index
    %69 = vector.load %arg7[%c4, %c0_34, %c0_35] : memref<9x8x8xbf16, #tpu.memory_space<vmem>>, vector<1x8x8xbf16>
    %70 = vector.shape_cast %69 : vector<1x8x8xbf16> to vector<8x8xbf16>
    %cst_36 = arith.constant dense<0.000000e+00> : vector<32x8xf32>
    %71 = tpu.matmul %68, %70, %cst_36 {dimension_numbers = #tpu.dot_dimension_numbers<[1], [0], [0], [1], [0, 0, 1, 1], [], []>} : vector<32x8xbf16>, vector<8x8xbf16>, vector<32x8xf32> -> vector<32x8xf32>
    %72 = arith.addf %65, %71 : vector<32x8xf32>
    %73 = vector.extract_strided_slice %36 {offsets = [1, 2, 0], sizes = [4, 8, 8], strides = [1, 1, 1]} : vector<6x10x8xf32> to vector<4x8x8xf32>
    %74 = vector.shape_cast %73 : vector<4x8x8xf32> to vector<32x8xf32>
    %75 = arith.truncf %74 : vector<32x8xf32> to vector<32x8xbf16>
    %c5 = arith.constant 5 : index
    %c0_37 = arith.constant 0 : index
    %c0_38 = arith.constant 0 : index
    %76 = vector.load %arg7[%c5, %c0_37, %c0_38] : memref<9x8x8xbf16, #tpu.memory_space<vmem>>, vector<1x8x8xbf16>
    %77 = vector.shape_cast %76 : vector<1x8x8xbf16> to vector<8x8xbf16>
    %cst_39 = arith.constant dense<0.000000e+00> : vector<32x8xf32>
    %78 = tpu.matmul %75, %77, %cst_39 {dimension_numbers = #tpu.dot_dimension_numbers<[1], [0], [0], [1], [0, 0, 1, 1], [], []>} : vector<32x8xbf16>, vector<8x8xbf16>, vector<32x8xf32> -> vector<32x8xf32>
    %79 = arith.addf %72, %78 : vector<32x8xf32>
    %80 = vector.extract_strided_slice %36 {offsets = [2, 0, 0], sizes = [4, 8, 8], strides = [1, 1, 1]} : vector<6x10x8xf32> to vector<4x8x8xf32>
    %81 = vector.shape_cast %80 : vector<4x8x8xf32> to vector<32x8xf32>
    %82 = arith.truncf %81 : vector<32x8xf32> to vector<32x8xbf16>
    %c6 = arith.constant 6 : index
    %c0_40 = arith.constant 0 : index
    %c0_41 = arith.constant 0 : index
    %83 = vector.load %arg7[%c6, %c0_40, %c0_41] : memref<9x8x8xbf16, #tpu.memory_space<vmem>>, vector<1x8x8xbf16>
    %84 = vector.shape_cast %83 : vector<1x8x8xbf16> to vector<8x8xbf16>
    %cst_42 = arith.constant dense<0.000000e+00> : vector<32x8xf32>
    %85 = tpu.matmul %82, %84, %cst_42 {dimension_numbers = #tpu.dot_dimension_numbers<[1], [0], [0], [1], [0, 0, 1, 1], [], []>} : vector<32x8xbf16>, vector<8x8xbf16>, vector<32x8xf32> -> vector<32x8xf32>
    %86 = arith.addf %79, %85 : vector<32x8xf32>
    %87 = vector.extract_strided_slice %36 {offsets = [2, 1, 0], sizes = [4, 8, 8], strides = [1, 1, 1]} : vector<6x10x8xf32> to vector<4x8x8xf32>
    %88 = vector.shape_cast %87 : vector<4x8x8xf32> to vector<32x8xf32>
    %89 = arith.truncf %88 : vector<32x8xf32> to vector<32x8xbf16>
    %c7 = arith.constant 7 : index
    %c0_43 = arith.constant 0 : index
    %c0_44 = arith.constant 0 : index
    %90 = vector.load %arg7[%c7, %c0_43, %c0_44] : memref<9x8x8xbf16, #tpu.memory_space<vmem>>, vector<1x8x8xbf16>
    %91 = vector.shape_cast %90 : vector<1x8x8xbf16> to vector<8x8xbf16>
    %cst_45 = arith.constant dense<0.000000e+00> : vector<32x8xf32>
    %92 = tpu.matmul %89, %91, %cst_45 {dimension_numbers = #tpu.dot_dimension_numbers<[1], [0], [0], [1], [0, 0, 1, 1], [], []>} : vector<32x8xbf16>, vector<8x8xbf16>, vector<32x8xf32> -> vector<32x8xf32>
    %93 = arith.addf %86, %92 : vector<32x8xf32>
    %94 = vector.extract_strided_slice %36 {offsets = [2, 2, 0], sizes = [4, 8, 8], strides = [1, 1, 1]} : vector<6x10x8xf32> to vector<4x8x8xf32>
    %95 = vector.shape_cast %94 : vector<4x8x8xf32> to vector<32x8xf32>
    %96 = arith.truncf %95 : vector<32x8xf32> to vector<32x8xbf16>
    %c8 = arith.constant 8 : index
    %c0_46 = arith.constant 0 : index
    %c0_47 = arith.constant 0 : index
    %97 = vector.load %arg7[%c8, %c0_46, %c0_47] : memref<9x8x8xbf16, #tpu.memory_space<vmem>>, vector<1x8x8xbf16>
    %98 = vector.shape_cast %97 : vector<1x8x8xbf16> to vector<8x8xbf16>
    %cst_48 = arith.constant dense<0.000000e+00> : vector<32x8xf32>
    %99 = tpu.matmul %96, %98, %cst_48 {dimension_numbers = #tpu.dot_dimension_numbers<[1], [0], [0], [1], [0, 0, 1, 1], [], []>} : vector<32x8xbf16>, vector<8x8xbf16>, vector<32x8xf32> -> vector<32x8xf32>
    %100 = arith.addf %93, %99 : vector<32x8xf32>
    %cst_49 = arith.constant dense<0.000000e+00> : vector<8xf32>
    %101 = vector.multi_reduction <add>, %100, %cst_49 [0] : vector<32x8xf32> to vector<8xf32>
    %102 = vector.shape_cast %101 : vector<8xf32> to vector<1x8xf32>
    %103 = arith.mulf %100, %100 : vector<32x8xf32>
    %cst_50 = arith.constant dense<0.000000e+00> : vector<8xf32>
    %104 = vector.multi_reduction <add>, %103, %cst_50 [0] : vector<32x8xf32> to vector<8xf32>
    %105 = vector.shape_cast %104 : vector<8xf32> to vector<1x8xf32>
    %106 = tpu.concatenate %102, %105 in 1 : vector<1x8xf32>, vector<1x8xf32> -> vector<1x16xf32>
    %107 = vector.shape_cast %106 : vector<1x16xf32> to vector<1x1x16xf32>
    %c0_51 = arith.constant 0 : index
    %c0_52 = arith.constant 0 : index
    %c0_53 = arith.constant 0 : index
    %108 = vector.load %arg9[%c0_51, %c0_52, %c0_53] : memref<1x1x16xf32, #tpu.memory_space<vmem>>, vector<1x1x16xf32>
    tpu.vector_store %arg9[%c0_51, %c0_52, %c0_53], %107 {strides = array<i32>} : memref<1x1x16xf32, #tpu.memory_space<vmem>>, vector<1x1x16xf32>,
    %109 = vector.shape_cast %100 : vector<32x8xf32> to vector<1x4x8x8xf32>
    %110 = arith.truncf %109 : vector<1x4x8x8xf32> to vector<1x4x8x8xbf16>
    %c0_54 = arith.constant 0 : index
    %c0_55 = arith.constant 0 : index
    %c0_56 = arith.constant 0 : index
    %c0_57 = arith.constant 0 : index
    %111 = vector.load %arg8[%c0_54, %c0_55, %c0_56, %c0_57] : memref<1x4x8x8xbf16, #tpu.memory_space<vmem>>, vector<1x4x8x8xbf16>
    tpu.vector_store %arg8[%c0_54, %c0_55, %c0_56, %c0_57], %110 {strides = array<i32>} : memref<1x4x8x8xbf16, #tpu.memory_space<vmem>>, vector<1x4x8x8xbf16>,
    return
  }
  func.func @transform_0(%arg0: i32, %arg1: i32) -> (i32, i32, i32, i32) {
    %c0_i32 = arith.constant 0 : i32
    %c0_i32_0 = arith.constant 0 : i32
    %c0_i32_1 = arith.constant 0 : i32
    return %arg0, %arg1, %c0_i32, %c0_i32_0 : i32, i32, i32, i32
  }
  func.func @transform_1(%arg0: i32, %arg1: i32) -> (i32, i32, i32, i32) {
    %c4_i32 = arith.constant 4 : i32
    %0 = arith.muli %arg1, %c4_i32 : i32
    %c1_i32 = arith.constant 1 : i32
    %1 = arith.subi %0, %c1_i32 : i32
    %c0_i32 = arith.constant 0 : i32
    %2 = arith.maxsi %1, %c0_i32 : i32
    %c0_i32_0 = arith.constant 0 : i32
    %c0_i32_1 = arith.constant 0 : i32
    %c0_i32_2 = arith.constant 0 : i32
    return %arg0, %2, %c0_i32_0, %c0_i32_1 : i32, i32, i32, i32
  }
  func.func @transform_2(%arg0: i32, %arg1: i32) -> (i32, i32, i32, i32) {
    %c1_i32 = arith.constant 1 : i32
    %0 = arith.addi %arg1, %c1_i32 : i32
    %c4_i32 = arith.constant 4 : i32
    %1 = arith.muli %0, %c4_i32 : i32
    %c7_i32 = arith.constant 7 : i32
    %2 = arith.minsi %1, %c7_i32 : i32
    %c0_i32 = arith.constant 0 : i32
    %c0_i32_0 = arith.constant 0 : i32
    %c0_i32_1 = arith.constant 0 : i32
    return %arg0, %2, %c0_i32, %c0_i32_0 : i32, i32, i32, i32
  }
  func.func @transform_3(%arg0: i32, %arg1: i32) -> (i32, i32) {
    %c0_i32 = arith.constant 0 : i32
    %c0_i32_0 = arith.constant 0 : i32
    %c0_i32_1 = arith.constant 0 : i32
    return %c0_i32, %c0_i32_0 : i32, i32
  }
  func.func @transform_4(%arg0: i32, %arg1: i32) -> (i32, i32) {
    %c0_i32 = arith.constant 0 : i32
    %c0_i32_0 = arith.constant 0 : i32
    %c0_i32_1 = arith.constant 0 : i32
    return %c0_i32, %c0_i32_0 : i32, i32
  }
  func.func @transform_5(%arg0: i32, %arg1: i32) -> (i32, i32, i32) {
    %c0_i32 = arith.constant 0 : i32
    %c0_i32_0 = arith.constant 0 : i32
    %c0_i32_1 = arith.constant 0 : i32
    %c0_i32_2 = arith.constant 0 : i32
    return %c0_i32, %c0_i32_0, %c0_i32_1 : i32, i32, i32
  }
  func.func @transform_6(%arg0: i32, %arg1: i32) -> (i32, i32, i32, i32) {
    %c0_i32 = arith.constant 0 : i32
    %c0_i32_0 = arith.constant 0 : i32
    %c0_i32_1 = arith.constant 0 : i32
    return %arg0, %arg1, %c0_i32, %c0_i32_0 : i32, i32, i32, i32
  }
  func.func @transform_7(%arg0: i32, %arg1: i32) -> (i32, i32, i32) {
    %c2_i32 = arith.constant 2 : i32
    %0 = arith.muli %arg0, %c2_i32 : i32
    %1 = arith.addi %0, %arg1 : i32
    %c0_i32 = arith.constant 0 : i32
    %c0_i32_0 = arith.constant 0 : i32
    %c0_i32_1 = arith.constant 0 : i32
    return %1, %c0_i32, %c0_i32_0 : i32, i32, i32
  }
}

</mosaic_0001>

<bundles_post_ra>
// kernel: encoder_block_pallas.3
= control target key start
LH: loop header
LB: loop body
LE: loop exit
PB: predicated region body
PF: predicated region fallthrough
CT: control target
= control target key end

     0   :  { %s565_s15 = smov 0   ;;  %s631_s0 = inlined_call_operand.vmem [shape: bf16[16,8,16], index: 0, kind: input, shape index: {}]   ;;  %s632_s1 = inlined_call_operand.vmem [shape: bf16[16,8], index: 1, kind: input, shape index: {}]   ;;  %s633_s2 = inlined_call_operand.vmem [shape: f32[1,8], index: 2, kind: input, shape index: {}]   ;;  %s634_s3 = inlined_call_operand.vmem [shape: f32[16,8,8], index: 3, kind: output, shape index: {0}]   ;;  %s635_s4 = inlined_call_operand.vmem [shape: f32[2,1,16], index: 4, kind: output, shape index: {1}]  }
   0x1 LB: > { %s571_s16 = sadd.s32 4294967295, %s537_s15   ;;  %p483_p0 = scmp.ge.s32.totalorder %s537_s15, 1  ;;  %s537_s15 = sphi %s565_s15, %s15_s15  }
   0x2   : > { %p166_p1 = scmp.lt.s32.totalorder %s537_s15, 3 }
   0x4   : > { %p167_p2 = pnand %p483_p0, %p166_p1 }
   0x5   : > { %v526_v0 = vld [vmem:[%s632_s1] sm:$0xff] (!%p167_p2)   ;;  %s484_s19 = sshll.u32 (!%p167_p2), %s571_s16, 3  ;;  %vm254_vm0 = vcmask (!%p167_p2), 130048   ;;  %vm332_vm1 = vcmask (!%p167_p2), 64512   ;;  %s539_s30 = smov (!%p167_p2), 8   ;;  %vm396_vm2 = vcmask (!%p167_p2), 122880  }
   0x6   : > { %170 = sbr.rel (%p167_p2) target bundleno = 381 (0x17d), region = 32  ;;  %p196_p3 = scmp.lt.s32.totalorder (!%p167_p2), %s484_s19, 15  ;;  %505 = vmatprep.subr.bf16.mxu0 (!%p167_p2), %v526_v0  ;;  %515 = vmatprep.subr.bf16.mxu1 (!%p167_p2), %v526_v0  ;;  %v488_v5 = vld [vmem:[%s633_s2] ss:$0 sm:$0xff] (!%p167_p2) }
   0x7   : > { %506 = vmatpush3.bf16.msra.mxu0 (!%p167_p2), %v526_v0  ;;  %516 = vmatpush3.bf16.msra.mxu1 (!%p167_p2), %v526_v0  ;;  %p207_p4 = scmp.lt.s32.totalorder (!%p167_p2), %s571_s16, 1 }
   0xd   : > { %s637_s19 = smov (!%p196_p3, %s484_s19), 15  ;;  %s639_s16 = smov (!%p207_p4, %s571_s16), 1 }
   0xe   : > { %s485_s20 = sshll.u32 %s637_s19, 2  ;;  %s487_s24 = sshll.u32 %s637_s19, 3 }
   0xf   : > { %s199_s23 = scalar_lea.vmem %s631_s0, %s485_s20  ;;  %s588_s29 = scalar_lea.vmem %s634_s3, %s487_s24 }
  0x10   : > { %v527_v1 = vld [vmem:[%s199_s23] sm:$0xff]   ;;  %v528_v2 = vld [vmem:[%s199_s23 + $0x8] sm:$0xff]   ;;  %v529_v3 = vld [vmem:[%s199_s23 + $0x10] sm:$0xff]   ;;  %s209_s7 = scalar_lea.vmem %s635_s4, %s639_s16 }
  0x11   : > { %507 = vmatprep.mubr.msk.bf16.mxu0 %vm254_vm0, %v527_v1  ;;  %v530_v4 = vld [vmem:[%s199_s23 + $0x18] sm:$0xff]   ;;  %511 = vmatprep.mubr.msk.bf16.mxu1 %vm254_vm0, %v529_v3 }
  0x12   : > { %508 = vmatmul.mubr.msk.bf16.vlgmr.msra.gmra.mrb[0].mxu0 %vm254_vm0, %v528_v2  ;;  %512 = vmatmul.mubr.msk.bf16.vlgmr.msra.gmra.mrb[0].mxu1 %vm254_vm0, %v530_v4 }
  0xe5   : > { %v509_v6 = vpop.f32.mrb[0].mxu0  ;;  %v513_v11 = vpop.f32.mrb[0].mxu1 }
  0xe6   : > { %v310_v7 = vadd.f32 %v509_v6, %v488_v5  ;;  %v301_v8 = vpop.f32.mrb[1].mxu0  ;;  %v326_v14 = vadd.f32 %v513_v11, %v488_v5  ;;  %v317_v15 = vpop.f32.mrb[1].mxu1 }
  0xe7   : > { %v302_v9 = vadd.f32 %v488_v5, %v301_v8  ;;  %v510_v10 = vpop.f32.mrb[2].mxu0  ;;  %v318_v18 = vadd.f32 %v488_v5, %v317_v15  ;;  %v514_v19 = vpop.f32.mrb[2].mxu1 }
  0xe8   : > { %335 = vst.msk [vmem:[%s588_s29 + $0x10] sm:$0xff] %vm332_vm1, %v310_v7  ;;  %v313_v12 = vadd.f32 %v510_v10, %v488_v5  ;;  %v304_v13 = vpop.f32.mrb[3].mxu0  ;;  %339 = vst.msk [vmem:[%s588_s29 + $0x30] sm:$0xff] %vm332_vm1, %v326_v14  ;;  %v320_v20 = vpop.f32.mrb[3].mxu1  ;;  %v364_v21 = vmul.f32 %v310_v7, %v310_v7  ;;  %v344_v25 = vsel %vm332_vm1, %v310_v7, 0.0  ;;  %v329_v31 = vadd.f32 %v514_v19, %v488_v5 }
  0xe9   : > { %333 = vst.msk [vmem:[%s588_s29] sm:$0xff] %vm332_vm1, %v302_v9  ;;  %v362_v16 = vmul.f32 %v302_v9, %v302_v9  ;;  %v305_v17 = vadd.f32 %v488_v5, %v304_v13  ;;  %v341_v22 = vsel %vm332_vm1, %v302_v9, 0.0  ;;  %337 = vst.msk [vmem:[%s588_s29 + $0x20] sm:$0xff] %vm332_vm1, %v318_v18  ;;  %v366_v30 = vmul.f32 %v318_v18, %v318_v18 }
  0xea   : > { %336 = vst.msk [vmem:[%s588_s29 + $0x18] sm:$0xff] %vm332_vm1, %v313_v12  ;;  %v365_v27 = vmul.f32 %v313_v12, %v313_v12  ;;  %v321_v32 = vadd.f32 %v488_v5, %v320_v20  ;;  %v373_v35 = vsel %vm332_vm1, %v364_v21, 0.0  ;;  %v346_v36 = vsel %vm332_vm1, %v313_v12, 0.0  ;;  %340 = vst.msk [vmem:[%s588_s29 + $0x38] sm:$0xff] %vm332_vm1, %v329_v31 }
  0xeb   : > { %334 = vst.msk [vmem:[%s588_s29 + $0x8] sm:$0xff] %vm332_vm1, %v305_v17  ;;  %v342_v23 = vsel %vm332_vm1, %v305_v17, 0.0  ;;  %v363_v24 = vmul.f32 %v305_v17, %v305_v17  ;;  %v370_v26 = vsel %vm332_vm1, %v362_v16, 0.0  ;;  %v348_v37 = vsel %vm332_vm1, %v318_v18, 0.0 }
  0xec   : > { %v343_v28 = vadd.f32 %v342_v23, %v341_v22  ;;  %338 = vst.msk [vmem:[%s588_s29 + $0x28] sm:$0xff] %vm332_vm1, %v321_v32  ;;  %v375_v40 = vsel %vm332_vm1, %v365_v27, 0.0  ;;  %v377_v41 = vsel %vm332_vm1, %v366_v30, 0.0  ;;  %v367_v42 = vmul.f32 %v321_v32, %v321_v32 }
  0xed   : > { %v371_v29 = vsel %vm332_vm1, %v363_v24, 0.0  ;;  %v368_v45 = vmul.f32 %v326_v14, %v326_v14  ;;  %v350_v46 = vsel %vm332_vm1, %v321_v32, 0.0  ;;  %v352_v49 = vsel %vm332_vm1, %v326_v14, 0.0 }
  0xee   : > { %v345_v33 = vadd.f32 %v344_v25, %v343_v28  ;;  %v372_v34 = vadd.f32 %v371_v29, %v370_v26  ;;  %v369_v50 = vmul.f32 %v329_v31, %v329_v31  ;;  %v379_v51 = vsel %vm332_vm1, %v367_v42, 0.0 }
  0xef   : > { %v381_v54 = vsel %vm332_vm1, %v368_v45, 0.0  ;;  %v354_v55 = vsel %vm332_vm1, %v329_v31, 0.0 }
  0xf0   : > { %v374_v38 = vadd.f32 %v373_v35, %v372_v34  ;;  %v347_v39 = vadd.f32 %v346_v36, %v345_v33  ;;  %v383_v58 = vsel %vm332_vm1, %v369_v50, 0.0 }
  0xf2   : > { %v349_v43 = vadd.f32 %v348_v37, %v347_v39  ;;  %v376_v44 = vadd.f32 %v375_v40, %v374_v38 }
  0xf4   : > { %v378_v47 = vadd.f32 %v377_v41, %v376_v44  ;;  %v351_v48 = vadd.f32 %v350_v46, %v349_v43 }
  0xf6   : > { %v353_v52 = vadd.f32 %v352_v49, %v351_v48  ;;  %v380_v53 = vadd.f32 %v379_v51, %v378_v47 }
  0xf8   : > { %v355_v56 = vadd.f32 %v354_v55, %v353_v52  ;;  %v382_v57 = vadd.f32 %v381_v54, %v380_v53 }
  0xfa   : > { %v384_v59 = vadd.f32 %v383_v58, %v382_v57  ;;  %v356_v2 = vrot.slane %v355_v56, 4 }
  0xfc   : > { %v385_v60 = vrot.slane %v384_v59, 4  ;;  %v357_v3 = vadd.f32 %v356_v2, %v355_v56 }
  0xfe   : > { %v386_v61 = vadd.f32 %v385_v60, %v384_v59  ;;  %v358_v4 = vrot.slane %v357_v3, 2 }
 0x100   : > { %v387_v62 = vrot.slane %v386_v61, 2  ;;  %v359_v5 = vadd.f32 %v358_v4, %v357_v3 }
 0x102   : > { %v388_v63 = vadd.f32 %v387_v62, %v386_v61  ;;  %v360_v6 = vrot.slane %v359_v5, 1 }
 0x104   : > { %v389_v0 = vrot.slane %v388_v63, 1  ;;  %v361_v7 = vadd.f32 %v360_v6, %v359_v5 }
 0x106   : > { %v390_v1 = vadd.f32 %v389_v0, %v388_v63 }
 0x108   : > { %392 = vrot.lane.b32.xlu0 %v390_v1, %s539_s30 }
 0x17a   : > { %v393_v8 = vpop.permute.xlu0 %392 }
 0x17b   : > { %v395_v9 = vsel %vm332_vm1, %v361_v7, %v393_v8 }
 0x17c   : > { %397 = vst.msk [vmem:[%s209_s7] sm:$0x1] %vm396_vm2, %v395_v9 }
 0x17d PF: > { %s15_s15 = sadd.s32 1, %s537_s15  }
 0x17e   : > { %p12_p5 = scmp.ge.s32.totalorder %s15_s15, 4  }
 0x180   :  { %14 = sbr.rel (!%p12_p5) target bundleno = 1 (0x1), region = 74 }

// kernel: encoder_block_pallas.4
= control target key start
LH: loop header
LB: loop body
LE: loop exit
PB: predicated region body
PF: predicated region fallthrough
CT: control target
= control target key end

     0   :  { %s1692_s24 = smov 0   ;;  %s1694_s25 = smov 0   ;;  %s1957_s0 = inlined_call_operand.vmem [shape: f32[2,8,8,8], index: 0, kind: input, shape index: {}, may-alias: {0,1,2}]   ;;  %s1958_s1 = inlined_call_operand.vmem [shape: f32[2,8,8,8], index: 1, kind: input, shape index: {}, may-alias: {0,1,2}]   ;;  %s1959_s2 = inlined_call_operand.vmem [shape: f32[2,8,8,8], index: 2, kind: input, shape index: {}, may-alias: {0,1,2}]   ;;  %s1960_s3 = inlined_call_operand.vmem [shape: f32[1,8], index: 3, kind: input, shape index: {}]   ;;  %s1961_s4 = inlined_call_operand.vmem [shape: f32[1,8], index: 4, kind: input, shape index: {}]   ;;  %s1962_s5 = inlined_call_operand.vmem [shape: bf16[9,8,8], index: 5, kind: input, shape index: {}]   ;;  %s1963_s6 = inlined_call_operand.vmem [shape: bf16[2,8,8,8], index: 6, kind: output, shape index: {0}]   ;;  %s1964_s7 = inlined_call_operand.vmem [shape: f32[4,1,16], index: 7, kind: output, shape index: {1}]  }
   0x1   :  { %s1696_s26 = smov 0   ;;  %s1698_s27 = smov 0  }
   0x2   :  { %s1700_s28 = smov 0  }
   0x3 LB: > { %s27_s29 = sadd.s32 1, %s1641_s26  ;;  %s30_s30 = sadd.s32 1, %s1645_s27  ;;  %s1649_s28 = sphi %s1700_s28, %s18_s28   ;;  %s1645_s27 = sphi %s1698_s27, %s1969_s27   ;;  %s1641_s26 = sphi %s1696_s26, %s1968_s26   ;;  %s1637_s25 = sphi %s1694_s25, %s1967_s25   ;;  %s1633_s24 = sphi %s1692_s24, %s1966_s24  }
   0x4   : > { %p28_p0 = scmp.ge.s32.totalorder %s27_s29, 2  ;;  %p1387_p1 = scmp.ge.s32.totalorder %s1649_s28, 1 }
   0x5   : > { %p327_p2 = scmp.lt.s32.totalorder %s1649_s28, 5 }
   0x6   : > { %s1971_s29 = smov (%p28_p0, %s27_s29), 0  ;;  %s1973_s30 = smov (!%p28_p0, %s30_s30), %s1645_s27 }
   0x7   : > { %p328_p3 = pnand %p1387_p1, %p327_p2  ;;  %p32_p4 = scmp.ge.s32.totalorder %s1973_s30, 2 }
   0x8   : > { %vm574_vm0 = vcmask (!%p328_p3), 1043456   ;;  %v1423_v0 = vld [vmem:[%s1962_s5 + $0x10] sm:$0xf] (!%p328_p3)  ;;  %s1388_s10 = sshll.u32 (!%p328_p3), %s1633_s24, 2  ;;  %p397_p5 = scmp.lt.s32.totalorder (!%p328_p3), %s1637_s25, 1  ;;  %vm522_vm1 = vcmask (!%p328_p3), 1040384  }
   0x9   : > { %s1975_s30 = smov (%p32_p4, %s1973_s30), 0  ;;  %331 = sbr.rel (%p328_p3) target bundleno = 443 (0x1bb), region = 44 }
   0xa   : > { %1565 = vmatprep.subr.msk.bf16.mxu0 (!%p328_p3), %vm574_vm0, %v1423_v0  ;;  %v851_v1 = vsel (!%p328_p3), %vm574_vm0, %v1423_v0, 0  ;;  %p399_p6 = scmp.lt.s32.totalorder (!%p328_p3), %s1388_s10, 7  ;;  %s1447_s11 = sadd.s32 (!%p328_p3), 4, %s1388_s10  ;;  %v1737_v2 = vld [vmem:[%s1962_s5 + $0x14] sm:$0xf] (!%p328_p3)  ;;  %vm546_vm2 = vcmask (!%p328_p3), 1046528  }
   0xb   : > { %1500 = vmatpush3.bf16.msra.mxu0 (!%p328_p3), %v851_v1  ;;  %v1412_v3 = vld [vmem:[%s1962_s5 + $0x4] sm:$0xf] (!%p328_p3)  ;;  %v1747_v4 = vld [vmem:[%s1962_s5] sm:$0xf] (!%p328_p3)  ;;  %p1751_p7 = scmp.lt.s32.totalorder (!%p328_p3), %s1447_s11, 7  ;;  %p494_p10 = scmp.gt.s32.totalorder (!%p328_p3), %s1633_s24, 0 }
   0xc   : > { %1566 = vmatprep.subr.msk.bf16.mxu0 (!%p328_p3), %vm574_vm0, %v1737_v2  ;;  %1561 = vmatprep.subr.msk.bf16.mxu1 (!%p328_p3), %vm574_vm0, %v1412_v3  ;;  %v576_v5 = vsel (!%p328_p3), %vm574_vm0, %v1412_v3, 0  ;;  %v1764_v6 = vld [vmem:[%s1960_s3] ss:$0 sm:$0xff] (!%p328_p3)  ;;  %vm567_vm3 = vcmask (!%p328_p3), 64512   ;;  %p499_p11 = scmp.lt.s32.totalorder (!%p328_p3), %s1633_s24, 1  ;;  %vm685_vm4 = vcmask (!%p328_p3), 1045504  }
   0xd   : > { %1476 = vmatpush3.bf16.msra.mxu1 (!%p328_p3), %v576_v5  ;;  %v1776_v7 = vld [vmem:[%s1961_s4] ss:$0 sm:$0xff] (!%p328_p3)  ;;  %v921_v58 = vsel (!%p328_p3), %vm574_vm0, %v1737_v2, 0  ;;  %v1429_v62 = vld [vmem:[%s1962_s5 + $0x18] sm:$0xf] (!%p328_p3)  ;;  %vm1213_vm7 = vcmask (!%p328_p3), 60416  }
   0xe   : > { %1562 = vmatprep.subr.msk.bf16.mxu1 (!%p328_p3), %vm574_vm0, %v1747_v4  ;;  %vm1207_vm8 = vcmask (!%p328_p3), 122880  }
  0x10   : > { %s398_s12 = scalar_select %p397_p5, %s1637_s25, 1 }
  0x11   : > { %s400_s15 = scalar_select %p399_p6, %s1388_s10, 7 }
  0x12   : > { %s1749_s20 = sshll.u32 %s398_s12, 3  ;;  %s1766_s12 = sadd.s32 4294967295, %s1388_s10 }
  0x13   : > { %s1758_s22 = sadd.s32 %s1749_s20, %s400_s15  ;;  %p408_p8 = scmp.gt.s32.totalorder %s1766_s12, 0 }
  0x14   : > { %s1390_s23 = sshll.u32 %s1758_s22, 3  ;;  %s1977_s11 = smov (!%p1751_p7, %s1447_s11), 7 }
  0x15   : > { %s404_s15 = scalar_lea.vmem %s1957_s0, %s1390_s23  ;;  %s1979_s11 = smov (!%p1751_p7, %s1977_s11), 7 }
  0x16   : > { %v458_v8 = vld [vmem:[%s404_s15] sm:$0xff]  ;;  %v459_v9 = vld [vmem:[%s404_s15 + $0x8] sm:$0xff]  ;;  %v460_v10 = vld [vmem:[%s404_s15 + $0x10] sm:$0xff]  ;;  %s409_s10 = scalar_select %p408_p8, %s1766_s12, 0 }
  0x17   : > { %v461_v11 = vld [vmem:[%s404_s15 + $0x18] sm:$0xff]  ;;  %v468_v12 = vmul.f32 %v1764_v6, %v458_v8  ;;  %v469_v13 = vmul.f32 %v1764_v6, %v459_v9  ;;  %v470_v14 = vmul.f32 %v1764_v6, %v460_v10  ;;  %p1393_p9 = scmp.lt.s32.totalorder %s1766_s12, 7  ;;  %s431_s18 = sadd.s32 %s1749_s20, %s1979_s11 }
  0x18   : > { %v471_v15 = vmul.f32 %v1764_v6, %v461_v11  ;;  %s1405_s19 = sshll.u32 %s431_s18, 3  ;;  %s1408_s9 = sshll.u32 %s1758_s22, 2 }
  0x19   : > { %v478_v16 = vadd.f32 %v1776_v7, %v468_v12  ;;  %v479_v17 = vadd.f32 %v1776_v7, %v469_v13  ;;  %v480_v18 = vadd.f32 %v1776_v7, %v470_v14  ;;  %s1981_s10 = smov (!%p1393_p9, %s409_s10), 7  ;;  %s433_s13 = scalar_lea.vmem %s1959_s2, %s1405_s19 }
  0x1a   : > { %v481_v19 = vadd.f32 %v1776_v7, %v471_v15  ;;  %s415_s11 = sadd.s32 %s1981_s10, %s1749_s20  ;;  %v490_v46 = vld [vmem:[%s433_s13] sm:$0xff]  ;;  %s1651_s22 = smov 8  }
  0x1b   : > { %v482_v20 = vmax.f32 %v478_v16, 0.0  ;;  %v483_v21 = vmax.f32 %v479_v17, 0.0  ;;  %v484_v22 = vmax.f32 %v480_v18, 0.0  ;;  %s1399_s21 = sshll.u32 %s415_s11, 3  ;;  %v491_v56 = vmul.f32 %v1764_v6, %v490_v46  ;;  %s1409_s15 = sshll.u32 %s1637_s25, 1 }
  0x1c   : > { %v485_v23 = vmax.f32 %v481_v19, 0.0  ;;  %s417_s20 = scalar_lea.vmem %s1958_s1, %s1399_s21  ;;  %s449_s16 = sadd.s32 %s1633_s24, %s1409_s15 }
  0x1d   : > { %v511_v24 = vrot.slane %v482_v20, 7  ;;  %v512_v25 = vrot.slane %v483_v21, 7  ;;  %v513_v26 = vrot.slane %v484_v22, 7  ;;  %v486_v43 = vld [vmem:[%s417_s20] sm:$0xff]  ;;  %s495_s14 = scalar_select %p494_p10, 1, 0 }
  0x1e   : > { %v514_v27 = vrot.slane %v485_v23, 7  ;;  %v487_v51 = vmul.f32 %v1764_v6, %v486_v43  ;;  %s500_s17 = scalar_select %p499_p11, 1, 0  ;;  %v492_v6 = vadd.f32 %v1776_v7, %v491_v56  ;;  %v983_v23 = vsel %vm574_vm0, %v1429_v62, 0 }
  0x1f   : > { %v1797_v28 = vsel %vm522_vm1, 0.0, %v511_v24  ;;  %v1800_v29 = vsel %vm522_vm1, 0.0, %v512_v25  ;;  %v1803_v30 = vsel %vm522_vm1, 0.0, %v513_v26  ;;  %v530_v31 = vsel %vm522_vm1, %v511_v24, 0.0  ;;  %p450_p12 = scmp.lt.s32.totalorder %s449_s16, 3 }
  0x20   : > { %v531_v32 = vsel %vm522_vm1, %v512_v25, 0.0  ;;  %v532_v33 = vsel %vm522_vm1, %v513_v26, 0.0  ;;  %v1811_v34 = vsel %vm522_vm1, 0.0, %v514_v27  ;;  %v550_v35 = vrot.slane %v1797_v28, 1  ;;  %v1417_v26 = vld [vmem:[%s1962_s5 + $0x8] sm:$0xf] }
  0x21   : > { %v551_v36 = vrot.slane %v530_v31, 1  ;;  %v553_v37 = vrot.slane %v1800_v29, 1  ;;  %v533_v38 = vsel %vm522_vm1, %v514_v27, 0.0  ;;  %v554_v39 = vrot.slane %v531_v32, 1  ;;  %s1983_s16 = smov (!%p450_p12, %s449_s16), 3 }
  0x22   : > { %v556_v40 = vrot.slane %v1803_v30, 1  ;;  %v557_v41 = vrot.slane %v532_v33, 1  ;;  %v836_v45 = vrot.slane %v1811_v34, 1  ;;  %v690_v48 = vrot.slane %v530_v31, 2  ;;  %s452_s18 = scalar_lea.vmem %s1964_s7, %s1983_s16 }
  0x23   : > { %v552_v42 = vsel %vm546_vm2, %v550_v35, %v551_v36  ;;  %v555_v44 = vsel %vm546_vm2, %v553_v37, %v554_v39  ;;  %v837_v49 = vrot.slane %v533_v38, 1  ;;  %v689_v52 = vrot.slane %v1797_v28, 2 }
  0x24   : > { %v558_v47 = vsel %vm546_vm2, %v556_v40, %v557_v41  ;;  %v840_v50 = vpack.c.bf16 %v555_v44, %v552_v42  ;;  %v693_v53 = vrot.slane %v531_v32, 2  ;;  %v496_v55 = vstv %s495_s14  ;;  %v1432_v32 = vld [vmem:[%s1962_s5 + $0x1c] sm:$0xf]  ;;  %s446_s14 = scalar_lea.vmem %s1963_s6, %s1408_s9 }
  0x25   : > { %v1833_v54 = vsel %vm546_vm2, %v836_v45, %v837_v49  ;;  %v488_v59 = vadd.f32 %v1776_v7, %v487_v51  ;;  %v1842_v60 = vsel %vm685_vm4, %v689_v52, %v690_v48  ;;  %v692_v61 = vrot.slane %v1800_v29, 2  ;;  %v1435_v45 = vld [vmem:[%s1962_s5 + $0x20] sm:$0xf] }
  0x26   : > { %1501 = vmatprep.mubr.msk.bf16.mxu0 %vm567_vm3, %v840_v50  ;;  %v841_v57 = vpack.c.bf16 %v1833_v54, %v558_v47  ;;  %v696_v63 = vrot.slane %v532_v33, 2  ;;  %v907_v0 = vrot.slane %v533_v38, 2  ;;  %vm497_vm5 = vcmp.eq.s32.totalorder %v496_v55, 1 }
  0x27   : > { %v489_v1 = vmax.f32 %v488_v59, 0.0  ;;  %v694_v2 = vsel %vm685_vm4, %v692_v61, %v693_v53  ;;  %v695_v3 = vrot.slane %v1803_v30, 2  ;;  %v906_v5 = vrot.slane %v1811_v34, 2 }
  0x28   : > { %1502 = vmatmul.mubr.msk.bf16.vlgmr.msra.gmra.mrb[0].mxu0 %vm567_vm3, %v841_v57  ;;  %v910_v8 = vpack.c.bf16 %v694_v2, %v1842_v60  ;;  %v501_v10 = vstv %s500_s17  ;;  %v493_v14 = vmax.f32 %v492_v6, 0.0  ;;  %v564_v19 = vpack.c.bf16 %v558_v47, %v555_v44 }
  0x29   : > { %1506 = vmatpush3.bf16.msra.mxu0 %v921_v58  ;;  %v498_v9 = vsel %vm497_vm5, %v489_v1, 0.0  ;;  %v697_v12 = vsel %vm685_vm4, %v695_v3, %v696_v63  ;;  %v1860_v13 = vsel %vm685_vm4, %v906_v5, %v907_v0  ;;  %vm502_vm6 = vcmp.eq.s32.totalorder %v501_v10, 1 }
  0x2a   : > { %1567 = vmatprep.subr.msk.bf16.mxu0 %vm574_vm0, %v1429_v62  ;;  %v510_v11 = vrot.slane %v498_v9, 7  ;;  %1507 = vmatprep.mubr.msk.bf16.mxu0 %vm567_vm3, %v910_v8  ;;  %v911_v18 = vpack.c.bf16 %v1860_v13, %v697_v12  ;;  %v503_v21 = vsel %vm502_vm6, %v493_v14, 0.0  ;;  %v634_v25 = vsel %vm574_vm0, %v1747_v4, 0 }
  0x2b   : > { %v515_v27 = vrot.slane %v503_v21, 7  ;;  %v536_v31 = vpack.c.bf16 %v1803_v30, %v1800_v29  ;;  %v1051_v39 = vsel %vm574_vm0, %v1432_v32, 0  ;;  %v713_v41 = vsel %vm574_vm0, %v1417_v26, 0 }
  0x2c   : > { %v523_v15 = vsel %vm522_vm1, 0.0, %v510_v11  ;;  %v529_v16 = vsel %vm522_vm1, %v510_v11, 0.0  ;;  %v703_v48 = vpack.c.bf16 %v697_v12, %v694_v2  ;;  %v1117_v49 = vsel %vm574_vm0, %v1435_v45, 0 }
  0x2d   : > { %v547_v7 = vrot.slane %v523_v15, 1  ;;  %v548_v17 = vrot.slane %v529_v16, 1  ;;  %v535_v24 = vpack.c.bf16 %v1797_v28, %v523_v15  ;;  %v686_v4 = vrot.slane %v523_v15, 2 }
  0x2e   : > { %v687_v33 = vrot.slane %v529_v16, 2  ;;  %v528_v35 = vsel %vm522_vm1, 0.0, %v515_v27  ;;  %v534_v38 = vsel %vm522_vm1, %v515_v27, 0.0  ;;  %v768_v50 = vpack.c.bf16 %v1800_v29, %v1797_v28 }
  0x2f   : > { %v549_v20 = vsel %vm546_vm2, %v547_v7, %v548_v17  ;;  %v976_v37 = vpack.c.bf16 %v528_v35, %v1811_v34  ;;  %v1040_v43 = vrot.slane %v528_v35, 1  ;;  %v1041_v44 = vrot.slane %v534_v38, 1 }
  0x30   : > { %v563_v22 = vpack.c.bf16 %v552_v42, %v549_v20  ;;  %v688_v36 = vsel %vm685_vm4, %v686_v4, %v687_v33  ;;  %v1420_v42 = vld [vmem:[%s1962_s5 + $0xc] sm:$0xf]  ;;  %v1107_v52 = vrot.slane %v534_v38, 2  ;;  %v1106_v53 = vrot.slane %v528_v35, 2 }
  0x31   : > { %v702_v40 = vpack.c.bf16 %v1842_v60, %v688_v36  ;;  %v1042_v46 = vsel %vm546_vm2, %v1040_v43, %v1041_v44  ;;  %v779_v51 = vsel %vm574_vm0, %v1420_v42, 0  ;;  %v769_v28 = vpack.c.bf16 %v1811_v34, %v1803_v30 }
  0x32   : > { %1477 = vmatprep.mubr.msk.bf16.mxu1 %vm567_vm3, %v563_v22  ;;  %v1044_v47 = vpack.c.bf16 %v1042_v46, %v1833_v54  ;;  %v1108_v54 = vsel %vm685_vm4, %v1106_v53, %v1107_v52 }
  0x33   : > { %1478 = vmatmul.mubr.msk.bf16.vlgmr.msra.gmra.mrb[0].mxu1 %vm567_vm3, %v564_v19  ;;  %v1110_v55 = vpack.c.bf16 %v1108_v54, %v1860_v13 }
  0x34   : > { %1508 = vmatmul.mubr.msk.bf16.vlgmr.msra.gmra.mrb[0].mxu0 %vm567_vm3, %v911_v18  ;;  %1482 = vmatpush3.bf16.msra.mxu1 %v634_v25 }
  0x35   : > { %1512 = vmatpush3.bf16.msra.mxu0 %v983_v23  ;;  %1483 = vmatprep.mubr.msk.bf16.mxu1 %vm567_vm3, %v535_v24 }
  0x36   : > { %1563 = vmatprep.subr.msk.bf16.mxu1 %vm574_vm0, %v1417_v26  ;;  %1513 = vmatprep.mubr.msk.bf16.mxu0 %vm567_vm3, %v536_v31 }
  0x37   : > { %1568 = vmatprep.subr.msk.bf16.mxu0 %vm574_vm0, %v1432_v32 }
  0x3f   : > { %1484 = vmatmul.mubr.msk.bf16.vlgmr.msra.gmra.mrb[0].mxu1 %vm567_vm3, %v536_v31 }
  0x40   : > { %1514 = vmatmul.mubr.msk.bf16.vlgmr.msra.gmra.mrb[0].mxu0 %vm567_vm3, %v976_v37  ;;  %1488 = vmatpush3.bf16.msra.mxu1 %v713_v41 }
  0x41   : > { %1518 = vmatpush3.bf16.msra.mxu0 %v1051_v39  ;;  %1489 = vmatprep.mubr.msk.bf16.mxu1 %vm567_vm3, %v702_v40 }
  0x42   : > { %1564 = vmatprep.subr.msk.bf16.mxu1 %vm574_vm0, %v1420_v42  ;;  %1519 = vmatprep.mubr.msk.bf16.mxu0 %vm567_vm3, %v564_v19 }
  0x43   : > { %1569 = vmatprep.subr.msk.bf16.mxu0 %vm574_vm0, %v1435_v45 }
  0x4b   : > { %1490 = vmatmul.mubr.msk.bf16.vlgmr.msra.gmra.mrb[0].mxu1 %vm567_vm3, %v703_v48 }
  0x4c   : > { %1520 = vmatmul.mubr.msk.bf16.vlgmr.msra.gmra.mrb[0].mxu0 %vm567_vm3, %v1044_v47  ;;  %1494 = vmatpush3.bf16.msra.mxu1 %v779_v51 }
  0x4d   : > { %1524 = vmatpush3.bf16.msra.mxu0 %v1117_v49  ;;  %1495 = vmatprep.mubr.msk.bf16.mxu1 %vm567_vm3, %v768_v50 }
  0x4e   : > { %1525 = vmatprep.mubr.msk.bf16.mxu0 %vm567_vm3, %v703_v48 }
  0x57   : > { %1496 = vmatmul.mubr.msk.bf16.vlgmr.msra.gmra.mrb[0].mxu1 %vm567_vm3, %v769_v28 }
  0x58   : > { %1526 = vmatmul.mubr.msk.bf16.vlgmr.msra.gmra.mrb[0].mxu0 %vm567_vm3, %v1110_v55 }
 0x12a   : > { %v1497_v56 = vpop.f32.mrb[0].mxu1 }
 0x12b   : > { %v1527_v29 = vpop.f32.mrb[0].mxu0  ;;  %v815_v58 = vpop.f32.mrb[1].mxu1 }
 0x12c   : > { %v1153_v57 = vpop.f32.mrb[1].mxu0  ;;  %v1529_v59 = vadd.f32 %v1527_v29, %v1497_v56  ;;  %v1498_v61 = vpop.f32.mrb[2].mxu1 }
 0x12d   : > { %v1528_v60 = vpop.f32.mrb[2].mxu0  ;;  %v1530_v62 = vadd.f32 %v1153_v57, %v815_v58  ;;  %v818_v30 = vpop.f32.mrb[3].mxu1 }
 0x12e   : > { %v1156_v63 = vpop.f32.mrb[3].mxu0  ;;  %v1211_v34 = vpack.c.bf16 %v1529_v59, %v1529_v59  ;;  %v1531_v0 = vadd.f32 %v1528_v60, %v1498_v61  ;;  %v1187_v5 = vmul.f32 %v1529_v59, %v1529_v59  ;;  %v1175_v13 = vsel %vm567_vm3, %v1529_v59, 0.0 }
 0x12f   : > { %v1185_v1 = vmul.f32 %v1530_v62, %v1530_v62  ;;  %v1209_v2 = vpack.c.bf16 %v1530_v62, %v1530_v62  ;;  %v1532_v3 = vadd.f32 %v1156_v63, %v818_v30  ;;  %v1172_v8 = vsel %vm567_vm3, %v1530_v62, 0.0 }
 0x130   : > { %1216 = vst.msk [vmem:[%s446_s14 + $0x8] sm:$0xf] %vm1213_vm7, %v1211_v34  ;;  %v1212_v6 = vpack.c.bf16 %v1531_v0, %v1531_v0  ;;  %v1188_v15 = vmul.f32 %v1531_v0, %v1531_v0  ;;  %v1192_v18 = vsel %vm567_vm3, %v1187_v5, 0.0  ;;  %v1177_v19 = vsel %vm567_vm3, %v1531_v0, 0.0 }
 0x131   : > { %1214 = vst.msk [vmem:[%s446_s14] sm:$0xf] %vm1213_vm7, %v1209_v2  ;;  %v1173_v9 = vsel %vm567_vm3, %v1532_v3, 0.0  ;;  %v1186_v10 = vmul.f32 %v1532_v3, %v1532_v3  ;;  %v1210_v11 = vpack.c.bf16 %v1532_v3, %v1532_v3  ;;  %v1189_v14 = vsel %vm567_vm3, %v1185_v1, 0.0 }
 0x132   : > { %1217 = vst.msk [vmem:[%s446_s14 + $0xc] sm:$0xf] %vm1213_vm7, %v1212_v6  ;;  %v1174_v12 = vadd.f32 %v1173_v9, %v1172_v8  ;;  %v1194_v22 = vsel %vm567_vm3, %v1188_v15, 0.0 }
 0x133   : > { %v1190_v16 = vsel %vm567_vm3, %v1186_v10, 0.0  ;;  %1215 = vst.msk [vmem:[%s446_s14 + $0x4] sm:$0xf] %vm1213_vm7, %v1210_v11 }
 0x134   : > { %v1176_v7 = vadd.f32 %v1175_v13, %v1174_v12  ;;  %v1191_v17 = vadd.f32 %v1190_v16, %v1189_v14 }
 0x136   : > { %v1178_v20 = vadd.f32 %v1177_v19, %v1176_v7  ;;  %v1193_v21 = vadd.f32 %v1192_v18, %v1191_v17 }
 0x138   : > { %v1195_v23 = vadd.f32 %v1194_v22, %v1193_v21  ;;  %v1179_v4 = vrot.slane %v1178_v20, 4 }
 0x13a   : > { %v1196_v24 = vrot.slane %v1195_v23, 4  ;;  %v1180_v33 = vadd.f32 %v1179_v4, %v1178_v20 }
 0x13c   : > { %v1197_v25 = vadd.f32 %v1196_v24, %v1195_v23  ;;  %v1181_v35 = vrot.slane %v1180_v33, 2 }
 0x13e   : > { %v1198_v26 = vrot.slane %v1197_v25, 2  ;;  %v1182_v36 = vadd.f32 %v1181_v35, %v1180_v33 }
 0x140   : > { %v1199_v27 = vadd.f32 %v1198_v26, %v1197_v25  ;;  %v1183_v37 = vrot.slane %v1182_v36, 1 }
 0x142   : > { %v1200_v31 = vrot.slane %v1199_v27, 1  ;;  %v1184_v38 = vadd.f32 %v1183_v37, %v1182_v36 }
 0x144   : > { %v1201_v32 = vadd.f32 %v1200_v31, %v1199_v27 }
 0x146   : > { %1203 = vrot.lane.b32.xlu0 %v1201_v32, %s1651_s22 }
 0x1b8   : > { %v1204_v39 = vpop.permute.xlu0 %1203 }
 0x1b9   : > { %v1206_v40 = vsel %vm567_vm3, %v1184_v38, %v1204_v39 }
 0x1ba   : > { %1208 = vst.msk [vmem:[%s452_s18] sm:$0x1] %vm1207_vm8, %v1206_v40 }
 0x1bb PF: > { %s18_s28 = sadd.s32 1, %s1649_s28   ;;  %s1966_s24 = smov %s1641_s26 }
 0x1bc   : > { %p15_p13 = scmp.ge.s32.totalorder %s18_s28, 6   ;;  %s1967_s25 = smov %s1645_s27 }
 0x1bd   : > { %s1968_s26 = smov %s1971_s29  ;;  %s1969_s27 = smov %s1975_s30 }
 0x1be   :  { %17 = sbr.rel (!%p15_p13) target bundleno = 3 (0x3), region = 100 }

// kernel: encoder_block_pallas.5
= control target key start
LH: loop header
LB: loop body
LE: loop exit
PB: predicated region body
PF: predicated region fallthrough
CT: control target
= control target key end

     0   :  { %s2058_s24 = smov 0   ;;  %s2060_s1 = smov 0   ;;  %s2348_s0 = inlined_call_operand.vmem [shape: bf16[2,8,8,8], index: 0, kind: input, shape index: {}, may-alias: {0,1,2}]   ;;  %s2349_s1 = inlined_call_operand.vmem [shape: bf16[2,8,8,8], index: 1, kind: input, shape index: {}, may-alias: {0,1,2}]   ;;  %s2350_s2 = inlined_call_operand.vmem [shape: bf16[2,8,8,8], index: 2, kind: input, shape index: {}, may-alias: {0,1,2}]   ;;  %s2351_s3 = inlined_call_operand.vmem [shape: f32[1,8], index: 3, kind: input, shape index: {}]   ;;  %s2352_s4 = inlined_call_operand.vmem [shape: f32[1,8], index: 4, kind: input, shape index: {}]   ;;  %s2353_s5 = inlined_call_operand.vmem [shape: bf16[9,8,8], index: 5, kind: input, shape index: {}]   ;;  %s2354_s6 = inlined_call_operand.vmem [shape: f32[2,8,8,8], index: 6, kind: input, shape index: {}]   ;;  %s2355_s7 = inlined_call_operand.vmem [shape: f32[2,8,64], index: 7, kind: output, shape index: {}]  }
   0x1   :  { %s2062_s2 = smov 0  }
   0x2 LB: > { %s29_s25 = sadd.s32 1, %s2011_s1  ;;  %p1675_p0 = scmp.ge.s32.totalorder %s2015_s2, 1  ;;  %s2015_s2 = sphi %s2062_s2, %s17_s2   ;;  %s2011_s1 = sphi %s2060_s1, %s2357_s1   ;;  %s2007_s24 = sphi %s2058_s24, %s2356_s24  }
   0x3   : > { %p31_p1 = scmp.ge.s32.totalorder %s29_s25, 2  ;;  %p337_p2 = scmp.lt.s32.totalorder %s2015_s2, 3 }
   0x5   : > { %s2359_s25 = smov (%p31_p1, %s29_s25), 0  ;;  %p338_p3 = pnand %p1675_p0, %p337_p2 }
   0x6   : > { %vm666_vm0 = vcmask (!%p338_p3), 1043456   ;;  %v2079_v0 = vld [vmem:[%s2353_s5 + $0x10] sm:$0xf] (!%p338_p3)  ;;  %v1687_v1 = vld [vmem:[%s2353_s5 + $0x4] sm:$0xf] (!%p338_p3)  ;;  %p409_p4 = scmp.lt.s32.totalorder (!%p338_p3), %s2007_s24, 1 }
   0x7   : > { %341 = sbr.rel (%p338_p3) target bundleno = 445 (0x1bd), region = 48  ;;  %1962 = vmatprep.subr.msk.bf16.mxu0 (!%p338_p3), %vm666_vm0, %v2079_v0  ;;  %1958 = vmatprep.subr.msk.bf16.mxu1 (!%p338_p3), %vm666_vm0, %v1687_v1  ;;  %v2089_v2 = vsel (!%p338_p3), %vm666_vm0, %v2079_v0, 0  ;;  %v668_v3 = vsel (!%p338_p3), %vm666_vm0, %v1687_v1, 0  ;;  %v2098_v4 = vld [vmem:[%s2353_s5 + $0x14] sm:$0xf] (!%p338_p3)  ;;  %v2017_v6 = vmov (!%p338_p3), 0.0  }
   0x8   : > { %1843 = vmatpush3.bf16.msra.mxu0 (!%p338_p3), %v2089_v2  ;;  %1803 = vmatpush3.bf16.msra.mxu1 (!%p338_p3), %v668_v3  ;;  %v2103_v5 = vld [vmem:[%s2353_s5] sm:$0xf] (!%p338_p3)  ;;  %v552_v7 = vrot.slane (!%p338_p3), %v2017_v6, 7  ;;  %vm572_vm1 = vcmask (!%p338_p3), 1040384   ;;  %vm614_vm2 = vcmask (!%p338_p3), 1046528   ;;  %vm653_vm3 = vcmask (!%p338_p3), 64512  }
   0x9   : > { %1964 = vmatprep.subr.msk.bf16.mxu0 (!%p338_p3), %vm666_vm0, %v2098_v4  ;;  %1959 = vmatprep.subr.msk.bf16.mxu1 (!%p338_p3), %vm666_vm0, %v2103_v5  ;;  %v1685_v8 = vld [vmem:[%s2351_s3] ss:$0 sm:$0xff] (!%p338_p3)  ;;  %v1159_v1 = vsel (!%p338_p3), %vm666_vm0, %v2098_v4, 0  ;;  %vm815_vm4 = vcmask (!%p338_p3), 1045504   ;;  %vm1538_vm5 = vcmask (!%p338_p3), 523264  }
   0xa   : > { %v1686_v17 = vld [vmem:[%s2352_s4] ss:$0 sm:$0xff] (!%p338_p3)  ;;  %v2120_v18 = vsel (!%p338_p3), %vm572_vm1, 0.0, %v552_v7  ;;  %v2123_v24 = vsel (!%p338_p3), %vm572_vm1, %v552_v7, 0.0 }
   0xb   : > { %v615_v34 = vrot.slane (!%p338_p3), %v2120_v18, 1  ;;  %v616_v35 = vrot.slane (!%p338_p3), %v2123_v24, 1 }
   0xd   : > { %v2128_v48 = vsel (!%p338_p3), %vm614_vm2, %v615_v34, %v616_v35 }
   0xe   : > { %s2361_s24 = smov (!%p409_p4, %s2007_s24), 1 }
   0xf   : > { %s1733_s11 = sshll.u32 %s2361_s24, 5  ;;  %s1737_s8 = sshll.u32 %s2361_s24, 6 }
  0x10   : > { %s416_s14 = scalar_lea.vmem %s2348_s0, %s1733_s11  ;;  %s2325_s11 = scalar_lea.vmem %s2354_s6, %s1737_s8 }
  0x11   : > { %v1739_v9 = vld [vmem:[%s416_s14] sm:$0xff]   ;;  %v1756_v10 = vld [vmem:[%s416_s14 + $0x18] sm:$0xff]   ;;  %v1754_v11 = vld [vmem:[%s416_s14 + $0x8] sm:$0xff]   ;;  %s1684_s12 = sshll.u32 %s2361_s24, 3 }
  0x12   : > { %v1740_v12 = vunpack.c.l.bf16 %v1739_v9  ;;  %v1752_v13 = vunpack.c.l.bf16 %v1756_v10  ;;  %v1753_v14 = vunpack.c.h.bf16 %v1756_v10  ;;  %v1741_v15 = vunpack.c.h.bf16 %v1739_v9  ;;  %v1755_v16 = vld [vmem:[%s416_s14 + $0x10] sm:$0xff]   ;;  %s466_s15 = scalar_lea.vmem %s2355_s7, %s1684_s12 }
  0x13   : > { %v1744_v19 = vunpack.c.l.bf16 %v1754_v11  ;;  %v1745_v20 = vunpack.c.h.bf16 %v1754_v11  ;;  %v1748_v21 = vunpack.c.l.bf16 %v1755_v16  ;;  %v1749_v33 = vunpack.c.h.bf16 %v1755_v16 }
  0x14   : > { %v492_v22 = vmul.f32 %v1740_v12, %v1685_v8  ;;  %v498_v23 = vmul.f32 %v1752_v13, %v1685_v8  ;;  %v493_v25 = vmul.f32 %v1741_v15, %v1685_v8  ;;  %v499_v26 = vmul.f32 %v1753_v14, %v1685_v8 }
  0x15   : > { %v494_v27 = vmul.f32 %v1744_v19, %v1685_v8  ;;  %v495_v28 = vmul.f32 %v1745_v20, %v1685_v8  ;;  %v496_v29 = vmul.f32 %v1748_v21, %v1685_v8  ;;  %v497_v47 = vmul.f32 %v1749_v33, %v1685_v8 }
  0x16   : > { %v506_v30 = vadd.f32 %v1686_v17, %v492_v22  ;;  %v512_v31 = vadd.f32 %v1686_v17, %v498_v23  ;;  %v507_v32 = vadd.f32 %v1686_v17, %v493_v25  ;;  %v513_v44 = vadd.f32 %v1686_v17, %v499_v26 }
  0x17   : > { %v508_v36 = vadd.f32 %v1686_v17, %v494_v27  ;;  %v509_v37 = vadd.f32 %v1686_v17, %v495_v28  ;;  %v510_v43 = vadd.f32 %v1686_v17, %v496_v29  ;;  %v511_v60 = vadd.f32 %v1686_v17, %v497_v47 }
  0x18   : > { %v514_v38 = vmax.f32 %v506_v30, 0.0  ;;  %v520_v39 = vmax.f32 %v512_v31, 0.0  ;;  %v515_v40 = vmax.f32 %v507_v32, 0.0  ;;  %v521_v59 = vmax.f32 %v513_v44, 0.0 }
  0x19   : > { %v516_v41 = vmax.f32 %v508_v36, 0.0  ;;  %v517_v42 = vmax.f32 %v509_v37, 0.0  ;;  %v518_v58 = vmax.f32 %v510_v43, 0.0  ;;  %v519_v14 = vmax.f32 %v511_v60, 0.0  ;;  %v1696_v37 = vld [vmem:[%s2353_s5 + $0x8] sm:$0xf] }
  0x1a   : > { %v553_v45 = vrot.slane %v514_v38, 7  ;;  %v559_v46 = vrot.slane %v520_v39, 7  ;;  %v554_v49 = vrot.slane %v515_v40, 7  ;;  %v560_v13 = vrot.slane %v521_v59, 7 }
  0x1b   : > { %v555_v50 = vrot.slane %v516_v41, 7  ;;  %v556_v54 = vrot.slane %v517_v42, 7  ;;  %v557_v12 = vrot.slane %v518_v58, 7  ;;  %v748_v15 = vsel %vm666_vm0, %v2103_v5, 0  ;;  %v1716_v42 = vld [vmem:[%s2353_s5 + $0x18] sm:$0xf] }
  0x1c   : > { %v2131_v51 = vsel %vm572_vm1, 0.0, %v553_v45  ;;  %v2134_v52 = vsel %vm572_vm1, 0.0, %v559_v46  ;;  %v2137_v53 = vsel %vm572_vm1, %v553_v45, 0.0  ;;  %v2140_v55 = vsel %vm572_vm1, %v559_v46, 0.0 }
  0x1d   : > { %v618_v56 = vrot.slane %v2131_v51, 1  ;;  %v619_v57 = vrot.slane %v2137_v53, 1  ;;  %v636_v62 = vrot.slane %v2134_v52, 1  ;;  %v2147_v63 = vsel %vm572_vm1, 0.0, %v554_v49 }
  0x1e   : > { %v637_v3 = vrot.slane %v2140_v55, 1  ;;  %v2154_v7 = vsel %vm572_vm1, 0.0, %v555_v50  ;;  %v2157_v8 = vsel %vm572_vm1, 0.0, %v556_v54  ;;  %v585_v9 = vsel %vm572_vm1, %v554_v49, 0.0 }
  0x1f   : > { %v620_v61 = vsel %vm614_vm2, %v618_v56, %v619_v57  ;;  %v586_v10 = vsel %vm572_vm1, %v555_v50, 0.0  ;;  %v587_v11 = vsel %vm572_vm1, %v556_v54, 0.0  ;;  %v621_v4 = vrot.slane %v2147_v63, 1 }
  0x20   : > { %v647_v6 = vpack.c.bf16 %v620_v61, %v2128_v48  ;;  %v622_v16 = vrot.slane %v585_v9, 1  ;;  %v624_v17 = vrot.slane %v2154_v7, 1  ;;  %v625_v19 = vrot.slane %v586_v10, 1 }
  0x21   : > { %v627_v20 = vrot.slane %v2157_v8, 1  ;;  %v2169_v21 = vsel %vm614_vm2, %v636_v62, %v637_v3  ;;  %v820_v22 = vrot.slane %v2137_v53, 2  ;;  %v628_v23 = vrot.slane %v587_v11, 1 }
  0x22   : > { %1804 = vmatprep.mubr.msk.bf16.mxu1 %vm653_vm3, %v647_v6  ;;  %v823_v25 = vrot.slane %v585_v9, 2  ;;  %v623_v26 = vsel %vm614_vm2, %v621_v4, %v622_v16  ;;  %v626_v27 = vsel %vm614_vm2, %v624_v17, %v625_v19  ;;  %v826_v28 = vrot.slane %v586_v10, 2 }
  0x23   : > { %v2175_v5 = vsel %vm572_vm1, 0.0, %v557_v12  ;;  %v629_v29 = vsel %vm614_vm2, %v627_v20, %v628_v23  ;;  %v2178_v30 = vpack.c.bf16 %v626_v27, %v623_v26  ;;  %v1042_v31 = vpack.c.bf16 %v623_v26, %v620_v61 }
  0x24   : > { %v588_v32 = vsel %vm572_vm1, %v557_v12, 0.0  ;;  %v1043_v33 = vpack.c.bf16 %v629_v29, %v626_v27  ;;  %v630_v34 = vrot.slane %v2175_v5, 1  ;;  %v558_v36 = vrot.slane %v519_v14, 7 }
  0x25   : > { %v631_v35 = vrot.slane %v588_v32, 1  ;;  %v829_v38 = vrot.slane %v587_v11, 2  ;;  %1844 = vmatprep.mubr.msk.bf16.mxu0 %vm653_vm3, %v1042_v31  ;;  %1805 = vmatmul.mubr.msk.bf16.vlgmr.msra.gmra.mrb[0].mxu1 %vm653_vm3, %v2178_v30  ;;  %v819_v39 = vrot.slane %v2131_v51, 2  ;;  %v822_v40 = vrot.slane %v2147_v63, 2 }
  0x26   : > { %v825_v41 = vrot.slane %v2154_v7, 2  ;;  %1845 = vmatmul.mubr.msk.bf16.vlgmr.msra.gmra.mrb[0].mxu0 %vm653_vm3, %v1043_v33  ;;  %v2199_v44 = vsel %vm572_vm1, 0.0, %v558_v36  ;;  %v589_v45 = vsel %vm572_vm1, %v558_v36, 0.0  ;;  %1813 = vmatpush3.bf16.msra.mxu1 %v748_v15  ;;  %v828_v46 = vrot.slane %v2157_v8, 2  ;;  %v1726_v36 = vld [vmem:[%s2353_s5 + $0x20] sm:$0xf] }
  0x27   : > { %v2196_v43 = vsel %vm614_vm2, %v630_v34, %v631_v35  ;;  %1853 = vmatpush3.bf16.msra.mxu0 %v1159_v1  ;;  %v633_v49 = vrot.slane %v2199_v44, 1  ;;  %v634_v50 = vrot.slane %v589_v45, 1  ;;  %v821_v53 = vsel %vm815_vm4, %v819_v39, %v820_v22  ;;  %1960 = vmatprep.subr.msk.bf16.mxu1 %vm666_vm0, %v1696_v37  ;;  %v1721_v22 = vld [vmem:[%s2353_s5 + $0x1c] sm:$0xf] }
  0x28   : > { %v2204_v47 = vpack.c.bf16 %v2196_v43, %v629_v29  ;;  %v824_v54 = vsel %vm815_vm4, %v822_v40, %v823_v25  ;;  %1965 = vmatprep.subr.msk.bf16.mxu0 %vm666_vm0, %v1716_v42  ;;  %v831_v56 = vrot.slane %v2175_v5, 2  ;;  %v593_v59 = vpack.c.bf16 %v2131_v51, %v2120_v18 }
  0x29   : > { %v2215_v57 = vsel %vm614_vm2, %v633_v49, %v634_v50  ;;  %v1140_v58 = vpack.c.bf16 %v824_v54, %v821_v53  ;;  %v832_v61 = vrot.slane %v588_v32, 2  ;;  %v834_v62 = vrot.slane %v2199_v44, 2  ;;  %v1490_v49 = vld [vmem:[%s2325_s11] sm:$0xff] }
  0x2a   : > { %1808 = vmatprep.mubr.msk.bf16.mxu1 %vm653_vm3, %v2204_v47  ;;  %v2221_v60 = vpack.c.bf16 %v2169_v21, %v2215_v57  ;;  %v835_v1 = vrot.slane %v589_v45, 2  ;;  %v2225_v3 = vsel %vm572_vm1, %v560_v13, 0.0  ;;  %v827_v6 = vsel %vm815_vm4, %v825_v41, %v826_v28 }
  0x2b   : > { %v830_v9 = vsel %vm815_vm4, %v828_v46, %v829_v38  ;;  %1854 = vmatprep.mubr.msk.bf16.mxu0 %vm653_vm3, %v1140_v58  ;;  %v2231_v10 = vsel %vm572_vm1, 0.0, %v560_v13  ;;  %v833_v11 = vsel %vm815_vm4, %v831_v56, %v832_v61  ;;  %v1137_v4 = vrot.slane %v2225_v3, 2 }
  0x2c   : > { %v836_v12 = vsel %vm815_vm4, %v834_v62, %v835_v1  ;;  %v1141_v14 = vpack.c.bf16 %v830_v9, %v827_v6  ;;  %v837_v16 = vrot.slane %v2134_v52, 2  ;;  %v838_v17 = vrot.slane %v2140_v55, 2 }
  0x2d   : > { %1809 = vmatmul.mubr.msk.bf16.gmra.mrb[4].mxu1 %vm653_vm3, %v2221_v60  ;;  %v1142_v15 = vpack.c.bf16 %v836_v12, %v833_v11  ;;  %v1136_v13 = vrot.slane %v2231_v10, 2  ;;  %v1241_v19 = vsel %vm666_vm0, %v1716_v42, 0  ;;  %v594_v20 = vpack.c.bf16 %v2154_v7, %v2147_v63 }
  0x2e   : > { %1814 = vmatprep.mubr.msk.bf16.mxu1 %vm653_vm3, %v593_v59  ;;  %v817_v23 = vrot.slane %v2123_v24, 2  ;;  %v595_v25 = vpack.c.bf16 %v2175_v5, %v2157_v8  ;;  %v839_v55 = vsel %vm815_vm4, %v837_v16, %v838_v17  ;;  %v867_v27 = vsel %vm666_vm0, %v1696_v37, 0  ;;  %v1701_v24 = vld [vmem:[%s2353_s5 + $0xc] sm:$0xf] }
  0x2f   : > { %v1138_v26 = vsel %vm815_vm4, %v1136_v13, %v1137_v4  ;;  %v816_v28 = vrot.slane %v2120_v18, 2  ;;  %v596_v32 = vpack.c.bf16 %v2134_v52, %v2199_v44  ;;  %v1329_v34 = vsel %vm666_vm0, %v1721_v22, 0  ;;  %v1491_v59 = vld [vmem:[%s2325_s11 + $0x8] sm:$0xff]  ;;  %v1493_v13 = vld [vmem:[%s2325_s11 + $0x18] sm:$0xff] }
  0x30   : > { %v1143_v29 = vpack.c.bf16 %v1138_v26, %v839_v55  ;;  %v849_v35 = vpack.c.bf16 %v827_v6, %v824_v54  ;;  %v850_v37 = vpack.c.bf16 %v833_v11, %v830_v9  ;;  %v961_v38 = vsel %vm666_vm0, %v1701_v24, 0 }
  0x31   : > { %v818_v31 = vsel %vm815_vm4, %v816_v28, %v817_v23  ;;  %v1234_v39 = vpack.c.bf16 %v2120_v18, %v2231_v10  ;;  %v851_v40 = vpack.c.bf16 %v839_v55, %v836_v12  ;;  %v942_v41 = vpack.c.bf16 %v2147_v63, %v2131_v51  ;;  %v1495_v23 = vld [vmem:[%s2325_s11 + $0x28] sm:$0xff]  ;;  %v1496_v55 = vld [vmem:[%s2325_s11 + $0x30] sm:$0xff] }
  0x32   : > { %1855 = vmatmul.mubr.msk.bf16.vlgmr.msra.gmra.mrb[0].mxu0 %vm653_vm3, %v1141_v14  ;;  %v848_v33 = vpack.c.bf16 %v821_v53, %v818_v31  ;;  %v1038_v18 = vrot.slane %v2231_v10, 1  ;;  %v1039_v42 = vrot.slane %v2225_v3, 1  ;;  %v1415_v45 = vsel %vm666_vm0, %v1726_v36, 0 }
  0x33   : > { %1863 = vmatpush3.bf16.msra.mxu0 %v1241_v19  ;;  %1858 = vmatprep.mubr.msk.bf16.mxu0 %vm653_vm3, %v1142_v15  ;;  %v944_v51 = vpack.c.bf16 %v2199_v44, %v2175_v5 }
  0x34   : > { %1966 = vmatprep.subr.msk.bf16.mxu0 %vm666_vm0, %v1721_v22  ;;  %v1040_v63 = vsel %vm614_vm2, %v1038_v18, %v1039_v42 }
  0x35   : > { %1815 = vmatmul.mubr.msk.bf16.vlgmr.msra.gmra.mrb[0].mxu1 %vm653_vm3, %v594_v20 }
  0x36   : > { %1818 = vmatprep.mubr.msk.bf16.mxu1 %vm653_vm3, %v595_v25  ;;  %1823 = vmatpush3.bf16.msra.mxu1 %v867_v27  ;;  %v1497_v27 = vld [vmem:[%s2325_s11 + $0x38] sm:$0xff] }
  0x37   : > { %1961 = vmatprep.subr.msk.bf16.mxu1 %vm666_vm0, %v1701_v24 }
  0x3a   : > { %1859 = vmatmul.mubr.msk.bf16.gmra.mrb[4].mxu0 %vm653_vm3, %v1143_v29 }
  0x3b   : > { %1864 = vmatprep.mubr.msk.bf16.mxu0 %vm653_vm3, %v594_v20  ;;  %v1494_v20 = vld [vmem:[%s2325_s11 + $0x20] sm:$0xff] }
  0x3d   : > { %1819 = vmatmul.mubr.msk.bf16.gmra.mrb[4].mxu1 %vm653_vm3, %v596_v32 }
  0x3e   : > { %1824 = vmatprep.mubr.msk.bf16.mxu1 %vm653_vm3, %v848_v33 }
  0x42   : > { %1865 = vmatmul.mubr.msk.bf16.vlgmr.msra.gmra.mrb[0].mxu0 %vm653_vm3, %v595_v25 }
  0x43   : > { %1873 = vmatpush3.bf16.msra.mxu0 %v1329_v34  ;;  %1868 = vmatprep.mubr.msk.bf16.mxu0 %vm653_vm3, %v596_v32 }
  0x44   : > { %1967 = vmatprep.subr.msk.bf16.mxu0 %vm666_vm0, %v1726_v36 }
  0x45   : > { %1825 = vmatmul.mubr.msk.bf16.vlgmr.msra.gmra.mrb[0].mxu1 %vm653_vm3, %v849_v35 }
  0x46   : > { %1828 = vmatprep.mubr.msk.bf16.mxu1 %vm653_vm3, %v850_v37  ;;  %1833 = vmatpush3.bf16.msra.mxu1 %v961_v38 }
  0x47   : > { %1963 = vmatprep.subr.msk.bf16.mxu1 %vm666_vm0, %v2079_v0  ;;  %v943_v0 = vpack.c.bf16 %v2157_v8, %v2154_v7  ;;  %v945_v7 = vpack.c.bf16 %v2231_v10, %v2134_v52  ;;  %v1044_v8 = vpack.c.bf16 %v2215_v57, %v2196_v43  ;;  %v1492_v10 = vld [vmem:[%s2325_s11 + $0x10] sm:$0xff] }
  0x4a   : > { %1869 = vmatmul.mubr.msk.bf16.gmra.mrb[4].mxu0 %vm653_vm3, %v1234_v39 }
  0x4b   : > { %1874 = vmatprep.mubr.msk.bf16.mxu0 %vm653_vm3, %v2178_v30  ;;  %v1322_v30 = vpack.c.bf16 %v2128_v48, %v1040_v63  ;;  %v1408_v48 = vpack.c.bf16 %v818_v31, %v1138_v26 }
  0x4d   : > { %1829 = vmatmul.mubr.msk.bf16.gmra.mrb[4].mxu1 %vm653_vm3, %v851_v40 }
  0x4e   : > { %1834 = vmatprep.mubr.msk.bf16.mxu1 %vm653_vm3, %v942_v41 }
  0x52   : > { %1875 = vmatmul.mubr.msk.bf16.vlgmr.msra.gmra.mrb[0].mxu0 %vm653_vm3, %v2204_v47 }
  0x53   : > { %1883 = vmatpush3.bf16.msra.mxu0 %v1415_v45  ;;  %1878 = vmatprep.mubr.msk.bf16.mxu0 %vm653_vm3, %v2221_v60 }
  0x55   : > { %1835 = vmatmul.mubr.msk.bf16.vlgmr.msra.gmra.mrb[0].mxu1 %vm653_vm3, %v943_v0 }
  0x56   : > { %1838 = vmatprep.mubr.msk.bf16.mxu1 %vm653_vm3, %v944_v51  ;;  %1893 = vmatpush3.bf16.msra.mxu1 %v2089_v2  ;;  %v1045_v2 = vpack.c.bf16 %v1040_v63, %v2169_v21 }
  0x5a   : > { %1879 = vmatmul.mubr.msk.bf16.gmra.mrb[4].mxu0 %vm653_vm3, %v1322_v30 }
  0x5b   : > { %1884 = vmatprep.mubr.msk.bf16.mxu0 %vm653_vm3, %v849_v35 }
  0x5d   : > { %1839 = vmatmul.mubr.msk.bf16.gmra.mrb[4].mxu1 %vm653_vm3, %v945_v7 }
  0x5e   : > { %1848 = vmatprep.mubr.msk.bf16.mxu1 %vm653_vm3, %v1044_v8 }
  0x62   : > { %1885 = vmatmul.mubr.msk.bf16.vlgmr.msra.gmra.mrb[0].mxu0 %vm653_vm3, %v850_v37 }
  0x63   : > { %1888 = vmatprep.mubr.msk.bf16.mxu0 %vm653_vm3, %v851_v40 }
  0x69   : > { %1849 = vmatmul.mubr.msk.bf16.vlgmr.msra.gmra.mrb[4].mxu1 %vm653_vm3, %v1045_v2 }
  0x6a   : > { %1889 = vmatmul.mubr.msk.bf16.gmra.mrb[4].mxu0 %vm653_vm3, %v1408_v48 }
 0x128   : > { %v1836_v52 = vpop.f32.mrb[0].mxu1 }
 0x129   : > { %v997_v5 = vpop.f32.mrb[1].mxu1 }
 0x12a   : > { %v1837_v43 = vpop.f32.mrb[2].mxu1 }
 0x12b   : > { %v1000_v44 = vpop.f32.mrb[3].mxu1 }
 0x135   : > { %v1886_v46 = vpop.f32.mrb[0].mxu0 }
 0x136   : > { %v1894_v47 = vadd.f32 %v1886_v46, %v1836_v52  ;;  %v1451_v21 = vpop.f32.mrb[1].mxu0 }
 0x137   : > { %v1895_v50 = vadd.f32 %v1451_v21, %v997_v5  ;;  %v1887_v53 = vpop.f32.mrb[2].mxu0 }
 0x138   : > { %v1896_v54 = vadd.f32 %v1887_v53, %v1837_v43  ;;  %v1454_v56 = vpop.f32.mrb[3].mxu0  ;;  %v1500_v17 = vadd.f32 %v1894_v47, %v1492_v10 }
 0x139   : > { %v1897_v57 = vadd.f32 %v1454_v56, %v1000_v44  ;;  %v1498_v58 = vadd.f32 %v1895_v50, %v1490_v49 }
 0x13a   : > { %v1501_v19 = vadd.f32 %v1896_v54, %v1493_v13 }
 0x13b   : > { %1506 = vxpose.xlu0.b32.start [1/8] (short) (narrow) %v1498_v58, 8  ;;  %v1499_v1 = vadd.f32 %v1897_v57, %v1491_v59 }
 0x13c   : > { %v1850_v60 = vpop.f32.mrb[4].mxu1 }
 0x13d   : > { %v1890_v61 = vpop.f32.mrb[4].mxu0  ;;  %v1113_v62 = vpop.f32.mrb[5].mxu1 }
 0x13e   : > { %v1898_v3 = vadd.f32 %v1890_v61, %v1850_v60  ;;  %v1467_v6 = vpop.f32.mrb[5].mxu0  ;;  %v1851_v9 = vpop.f32.mrb[6].mxu1 }
 0x13f   : > { %v1899_v11 = vadd.f32 %v1467_v6, %v1113_v62  ;;  %v1891_v12 = vpop.f32.mrb[6].mxu0  ;;  %1507 = vxpose.xlu0.b32.cont [2/8] (short) (narrow) %v1499_v1, 8  ;;  %v1116_v4 = vpop.f32.mrb[7].mxu1 }
 0x140   : > { %v1900_v14 = vadd.f32 %v1891_v12, %v1851_v9  ;;  %v1470_v15 = vpop.f32.mrb[7].mxu0  ;;  %v1504_v26 = vadd.f32 %v1898_v3, %v1496_v55 }
 0x141   : > { %v1901_v16 = vadd.f32 %v1470_v15, %v1116_v4  ;;  %v1502_v22 = vadd.f32 %v1899_v11, %v1494_v20 }
 0x142   : > { %v1505_v28 = vadd.f32 %v1900_v14, %v1497_v27 }
 0x143   : > { %1508 = vxpose.xlu0.b32.cont [3/8] (short) (narrow) %v1500_v17, 8  ;;  %v1503_v25 = vadd.f32 %v1901_v16, %v1495_v23 }
 0x147   : > { %1509 = vxpose.xlu0.b32.cont [4/8] (short) (narrow) %v1501_v19, 8 }
 0x14b   : > { %1510 = vxpose.xlu0.b32.cont [5/8] (short) (narrow) %v1502_v22, 8 }
 0x14f   : > { %1511 = vxpose.xlu0.b32.cont [6/8] (short) (narrow) %v1503_v25, 8 }
 0x153   : > { %1512 = vxpose.xlu0.b32.cont [7/8] (short) (narrow) %v1504_v26, 8 }
 0x157   : > { %1513 = vxpose.xlu0.b32.end [8/8] (short) (narrow) %v1505_v28, 8 }
 0x1bb   : > { %v1522_v24 = vpop.trf.xlu0 }
 0x1bc   : > { %1539 = vst.msk [vmem:[%s466_s15] sm:$0xff] %vm1538_vm5, %v1522_v24 }
 0x1bd PF: > { %s17_s2 = sadd.s32 1, %s2015_s2   ;;  %s2356_s24 = smov %s2011_s1 }
 0x1be   : > { %p14_p5 = scmp.ge.s32.totalorder %s17_s2, 4   ;;  %s2357_s1 = smov %s2359_s25 }
 0x1c0   :  { %16 = sbr.rel (!%p14_p5) target bundleno = 2 (0x2), region = 95 }

</bundles_post_ra>
